<compile_context>
chip_gen: v5e
topology: v5e:2x2
jax: 0.10.0
libtpu: 0.0.40
codegen_flags: <defaults>
</compile_context>

<pallas_src>
import functools

import jax
import jax.numpy as jnp
from jax import lax
from jax.experimental import pallas as pl
from jax.experimental.pallas import tpu as pltpu

EPS = 1e-5


# ---------------------------------------------------------------------------
# Fused Pallas kernel: whole BCResBlock chain for one batch block.
# All activations live in a lane-dense (rows, NB*T) layout.
# ---------------------------------------------------------------------------
def _silu(x):
    # exp -> EUP; approx reciprocal -> EUP.  Keeps the activation off the VALU.
    return x * pl.reciprocal(1.0 + jnp.exp(-x), approx=True)


def _base_block_body(h_in, x_res, a_bd, ssn_shift, pool, w_time, t_shift,
                     w_pw_exp, smat, *, kw):
    """One BaseBlock on VMEM-resident lane-dense slabs.

    h_in:      (C*F_in, L)        input to the depthwise frequency conv
    x_res:     (C*F_out, L) | None residual (block input)
    a_bd:      (C*F_out, C*F_in)  block-diag freq dw conv, SSN scale folded in
    ssn_shift: (C*F_out, 1)
    pool:      (C, C*F_out)       block-diag mean-over-F matrix
    w_time:    (C, kw)            temporal dw conv taps, BN scale folded in
    t_shift:   (C, 1)
    w_pw_exp:  (C*F_out, C)       1x1 conv with the F_out broadcast folded in
    smat:      (kw, L, L) ref     per-tap lane shift matrices ('same' padding)
    """
    # f2 tail: depthwise freq conv (stride/pad) + SubSpectralNorm -> one matmul
    aux = jnp.dot(a_bd, h_in, preferred_element_type=jnp.float32) + ssn_shift

    # f1: AdaptiveAvgPool2d((1, None)) == pooling matmul -> (C, L)
    z = jnp.dot(pool, aux, preferred_element_type=jnp.float32)

    # dilated temporal depthwise conv ('same' per sample) via shift matmuls,
    # then BN shift + SiLU.
    zt = jnp.zeros_like(z)
    for k in range(kw):                                   # static tap loop
        shifted = jnp.dot(z, smat[k], preferred_element_type=jnp.float32)
        zt = zt + w_time[:, k:k + 1] * shifted
    zt = _silu(zt + t_shift)

    # 1x1 conv (Dropout is identity in eval mode); F_out broadcast folded in.
    z1 = jnp.dot(w_pw_exp, zt, preferred_element_type=jnp.float32)   # (C*F_out, L)

    out = aux + z1
    if x_res is not None:
        out = out + x_res
    return jnp.maximum(out, 0.0)


def _bcres_chain_kernel(*refs, has_transition, num_rest, kw):
    refs = list(refs)
    i = 0
    x_ref = refs[i]; i += 1
    if has_transition:
        wt_ref, tsc_ref, tsh_ref = refs[i:i + 3]; i += 3
    a0_ref, ssn0_ref, wtime0_ref, tshift0_ref, wpw0_ref = refs[i:i + 5]; i += 5
    if num_rest > 0:
        ar_ref, ssnr_ref, wtimer_ref, tshiftr_ref, wpwr_ref = refs[i:i + 5]; i += 5
    pool_ref = refs[i]; i += 1
    smat_ref = refs[i]; i += 1
    o_ref = refs[i]

    x = x_ref[0].astype(jnp.float32)                      # (Cin*F_in, L)

    if has_transition:                                    # in_channels != out_channels
        # 1x1 conv + BN + ReLU as ONE lane-dense matmul (kron(W, I_F) folded).
        h = jnp.dot(wt_ref[...], x, preferred_element_type=jnp.float32)
        h = jnp.maximum(h * tsc_ref[...] + tsh_ref[...], 0.0)
        x_res = None
    else:                                                 # in_channels == out_channels
        h = x
        x_res = x

    pool = pool_ref[...]
    smat = smat_ref[...]

    h = _base_block_body(h, x_res, a0_ref[...], ssn0_ref[...], pool,
                         wtime0_ref[...], tshift0_ref[...], wpw0_ref[...],
                         smat, kw=kw)

    # TODO(synk): switch to lax.fori_loop(..., unroll=True) if num_blks > ~4.
    for b in range(num_rest):                             # static, unrolled
        h = _base_block_body(h, h, ar_ref[b], ssnr_ref[b], pool,
                             wtimer_ref[b], tshiftr_ref[b], wpwr_ref[b],
                             smat, kw=kw)

    o_ref[0] = h.astype(o_ref.dtype)                      # lane-dense store (L wide)


# ---------------------------------------------------------------------------
# Parameter folding (done once, outside the kernel, in plain JAX)
# ---------------------------------------------------------------------------
def _bn_affine(bn):
    scale = bn["gamma"] / jnp.sqrt(bn["var"] + EPS)
    shift = bn["beta"] - bn["mean"] * scale
    return scale, shift


def _freq_conv_matrix(w_f, f_in, stride_f, kh, dil_f):
    """Per-channel (F_out, F_in) matrix for the padded/strided/dilated depthwise
    frequency convolution: out[c] = M[c] @ x[c]."""
    pf = (kh - 1) * dil_f // 2
    f_out = (f_in + 2 * pf - dil_f * (kh - 1) - 1) // stride_f + 1
    src = stride_f * jnp.arange(f_out)[:, None] + dil_f * jnp.arange(kh)[None, :] - pf
    valid = (src >= 0) & (src < f_in)
    onehot = ((src[:, :, None] == jnp.arange(f_in)[None, None, :]) &
              valid[:, :, None]).astype(jnp.float32)          # (F_out, kh, F_in)
    return jnp.einsum("ck,okf->cof", w_f, onehot), f_out


def _fold_block(p, f_in, stride_f, kernel_size, dil, spec_groups):
    """Fold BN / SubSpectralNorm stats and conv weights into the dense,
    lane-dense-friendly operands consumed by the fused kernel."""
    kh, kw = kernel_size
    c = p["fdw_w"].shape[0]
    out = {}
    if "trans_w" in p:
        sc, sh = _bn_affine(p["trans_bn"])
        eye_f = jnp.eye(f_in, dtype=jnp.float32)
        out["trans_w"] = jnp.kron(p["trans_w"], eye_f)          # (C*F_in, Cin*F_in)
        out["trans_scale"] = jnp.repeat(sc, f_in)[:, None]
        out["trans_shift"] = jnp.repeat(sh, f_in)[:, None]
    a, f_out = _freq_conv_matrix(p["fdw_w"], f_in, stride_f, kh, dil[0])
    assert f_out % spec_groups == 0, "SubSpectralNorm needs F_out % spec_groups == 0"
    ssn_sc, ssn_sh = _bn_affine(p["ssn_bn"])                    # (C*G,)
    per = f_out // spec_groups
    ssn_sc = jnp.repeat(ssn_sc.reshape(c, spec_groups), per, axis=1)   # (C, F_out)
    ssn_sh = jnp.repeat(ssn_sh.reshape(c, spec_groups), per, axis=1)
    a = a * ssn_sc[:, :, None]                                  # SSN scale folded
    a_bd = a[:, :, None, :] * jnp.eye(c, dtype=jnp.float32)[:, None, :, None]
    out["A"] = a_bd.reshape(c * f_out, c * f_in)                # block-diagonal
    out["ssn_shift"] = ssn_sh.reshape(c * f_out, 1)
    t_sc, t_sh = _bn_affine(p["t_bn"])
    out["w_time"] = p["tdw_w"] * t_sc[:, None]
    out["t_shift"] = t_sh[:, None]
    out["w_pw"] = jnp.repeat(p["pw_w"], f_out, axis=0)          # (C*F_out, C)
    return out, f_out


_BLOCK_KEYS = ("A", "ssn_shift", "w_time", "t_shift", "w_pw")


def _pick_batch_block(n, t, max_lanes=512):
    """Largest divisor of n with nb*t <= max_lanes (lane-dense, bounded smat)."""
    nb = 1
    for cand in range(1, n + 1):
        if n % cand == 0 and cand * t <= max_lanes:
            nb = cand
    return nb


def bcres_block_forward(params, x, *, in_channels, out_channels, kernel_size,
                        stride, num_blks, idx, spec_groups=5):
    """Forward pass of BCResBlock: one fused, lane-dense Pallas kernel."""
    n, cin, f_in, t = x.shape
    assert cin == in_channels and len(params["blocks"]) == num_blks
    assert stride[1] == 1, "temporal stride != 1 breaks the residual broadcast"
    dil = (1, 2 ** idx)
    kw = kernel_size[1]
    dil_t = dil[1]

    folded = []
    f_cur = f_in
    for i, bp in enumerate(params["blocks"]):
        fb, f_cur = _fold_block(bp, f_cur, stride[0] if i == 0 else 1,
                                kernel_size, dil, spec_groups)
        folded.append(fb)
    f_out = f_cur

    b0 = folded[0]
    has_transition = "trans_w" in b0
    num_rest = num_blks - 1

    # Fold the batch into the lane axis: (N, C, F, T) -> (N//NB, C*F, NB*T).
    nb = _pick_batch_block(n, t)
    n_blk = n // nb
    lanes = nb * t
    x2 = (x.reshape(n_blk, nb, cin, f_in, t)
            .transpose(0, 2, 3, 1, 4)
            .reshape(n_blk, cin * f_in, lanes))

    # Per-tap lane shift matrices for the dilated temporal 'same' conv.
    pt = (kw - 1) * dil_t // 2
    lane_idx = jnp.arange(lanes)
    t_idx = lane_idx % t
    smats = []
    for k in range(kw):
        s = k * dil_t - pt
        valid = (t_idx + s >= 0) & (t_idx + s < t)
        src = lane_idx + s
        smats.append(((lane_idx[:, None] == src[None, :]) &
                      valid[None, :]).astype(jnp.float32))
    smat = jnp.stack(smats, axis=0)                             # (kw, L, L)

    # Mean-over-frequency pooling matrix (block-diagonal 1/F_out).
    pool = jnp.kron(jnp.eye(out_channels, dtype=jnp.float32),
                    jnp.ones((1, f_out), jnp.float32) / f_out)  # (C, C*F_out)

    def const_spec(arr):
        return pl.BlockSpec(arr.shape, lambda i_, _nd=arr.ndim: (0,) * _nd)

    inputs = [x2]
    in_specs = [pl.BlockSpec((1, cin * f_in, lanes), lambda i_: (i_, 0, 0))]
    if has_transition:
        for key in ("trans_w", "trans_scale", "trans_shift"):
            inputs.append(b0[key]); in_specs.append(const_spec(b0[key]))
    for key in _BLOCK_KEYS:
        inputs.append(b0[key]); in_specs.append(const_spec(b0[key]))
    if num_rest > 0:
        for key in _BLOCK_KEYS:
            stacked = jnp.stack([folded[i][key] for i in range(1, num_blks)], axis=0)
            inputs.append(stacked); in_specs.append(const_spec(stacked))
    inputs.append(pool); in_specs.append(const_spec(pool))
    inputs.append(smat); in_specs.append(const_spec(smat))

    rows_out = out_channels * f_out
    kernel = functools.partial(_bcres_chain_kernel, has_transition=has_transition,
                               num_rest=num_rest, kw=kw)
    out_slab = pl.pallas_call(
        kernel,
        grid=(n_blk,),
        in_specs=in_specs,
        out_specs=pl.BlockSpec((1, rows_out, lanes), lambda i_: (i_, 0, 0)),
        out_shape=jax.ShapeDtypeStruct((n_blk, rows_out, lanes), x.dtype),
        compiler_params=pltpu.CompilerParams(dimension_semantics=("parallel",)),
    )(*inputs)

    # Un-flatten the lane-dense slab back to (N, C, F_out, T) outside the kernel.
    return (out_slab.reshape(n_blk, out_channels, f_out, nb, t)
                    .transpose(0, 3, 1, 2, 4)
                    .reshape(n, out_channels, f_out, t))


# ---------------------------------------------------------------------------
# Pure-JAX reference (mirrors the PyTorch ops; used for a correctness check)
# ---------------------------------------------------------------------------
def _bn_ref(x, bn):
    scale = bn["gamma"] / jnp.sqrt(bn["var"] + EPS)
    shift = bn["beta"] - bn["mean"] * scale
    return x * scale[None, :, None, None] + shift[None, :, None, None]


def _conv_ref(x, w, stride, padding, dilation, groups):
    return lax.conv_general_dilated(
        x, w, window_strides=stride, padding=padding, rhs_dilation=dilation,
        feature_group_count=groups, dimension_numbers=("NCHW", "OIHW", "NCHW"),
        precision=lax.Precision.HIGHEST)


def _base_block_ref(x, p, kernel_size, stride_f, dil, spec_groups):
    kh, kw = kernel_size
    in_c = x.shape[1]
    h = x
    if "trans_w" in p:
        h = _conv_ref(h, p["trans_w"][:, :, None, None], (1, 1), ((0, 0), (0, 0)), (1, 1), 1)
        h = jnp.maximum(_bn_ref(h, p["trans_bn"]), 0.0)
    c = h.shape[1]
    pf = (kh - 1) * dil[0] // 2
    aux = _conv_ref(h, p["fdw_w"][:, None, :, None], (stride_f, 1),
                    ((pf, pf), (0, 0)), (dil[0], 1), c)
    nb_, _, fo, tt = aux.shape
    g = spec_groups
    aux = _bn_ref(aux.reshape(nb_, c * g, fo // g, tt), p["ssn_bn"]).reshape(nb_, c, fo, tt)
    z = jnp.mean(aux, axis=2, keepdims=True)              # AdaptiveAvgPool2d((1, None))
    pt = (kw - 1) * dil[1] // 2
    z = _conv_ref(z, p["tdw_w"][:, None, None, :], (1, 1), ((0, 0), (pt, pt)), (1, dil[1]), c)
    z = _bn_ref(z, p["t_bn"])
    z = z * jax.nn.sigmoid(z)                             # SiLU
    z = _conv_ref(z, p["pw_w"][:, :, None, None], (1, 1), ((0, 0), (0, 0)), (1, 1), 1)
    out = z + aux
    if in_c == c:
        out = out + x
    return jnp.maximum(out, 0.0)


def bcres_block_ref(params, x, kernel_size, stride, idx, spec_groups=5):
    dil = (1, 2 ** idx)
    h = x
    for i, bp in enumerate(params["blocks"]):
        h = _base_block_ref(h, bp, kernel_size, stride[0] if i == 0 else 1, dil, spec_groups)
    return h


# ---------------------------------------------------------------------------
# Parameter initialization (deterministic, synthetic, PyTorch-like structure)
# ---------------------------------------------------------------------------
def _init_bn(key, c):
    k1, k2, k3, k4 = jax.random.split(key, 4)
    return {
        "gamma": 1.0 + 0.1 * jax.random.normal(k1, (c,), jnp.float32),
        "beta": 0.1 * jax.random.normal(k2, (c,), jnp.float32),
        "mean": 0.1 * jax.random.normal(k3, (c,), jnp.float32),
        "var": 1.0 + 0.1 * jnp.abs(jax.random.normal(k4, (c,), jnp.float32)),
    }


def _init_base_block(key, in_c, out_c, kernel_size, spec_groups=5):
    kh, kw = kernel_size
    ks = jax.random.split(key, 7)
    p = {}
    if in_c != out_c:
        p["trans_w"] = 0.3 * jax.random.normal(ks[0], (out_c, in_c), jnp.float32)
        p["trans_bn"] = _init_bn(ks[1], out_c)
    p["fdw_w"] = 0.3 * jax.random.normal(ks[2], (out_c, kh), jnp.float32)
    p["ssn_bn"] = _init_bn(ks[3], out_c * spec_groups)
    p["tdw_w"] = 0.3 * jax.random.normal(ks[4], (out_c, kw), jnp.float32)
    p["t_bn"] = _init_bn(ks[5], out_c)
    p["pw_w"] = 0.3 * jax.random.normal(ks[6], (out_c, out_c), jnp.float32)
    return p


def init_bcres_block(key, in_channels, out_channels, kernel_size, num_blks, spec_groups=5):
    keys = jax.random.split(key, num_blks)
    blocks = [_init_base_block(keys[i], in_channels if i == 0 else out_channels,
                               out_channels, kernel_size, spec_groups)
              for i in range(num_blks)]
    return {"blocks": blocks}


# ---------------------------------------------------------------------------
if __name__ == "__main__":
    key = jax.random.PRNGKey(0)
    kp, kx = jax.random.split(key)

    # BCResBlock(in_channels=8, out_channels=12, kernel_size=(3, 3), stride=(2, 1),
    #            num_blks=2, idx=1): inner BaseBlocks use bias=False,
    #            dilation=(1, 2**idx), SubSpectralNorm(spec_groups=5).
    in_channels, out_channels = 8, 12
    kernel_size, stride = (3, 3), (2, 1)
    num_blks, idx = 2, 1
    batch, freq, time = 4, 20, 32        # freq 20 -> 10 (÷5); 4*32 = 128 lanes

    x = jax.random.normal(kx, (batch, in_channels, freq, time), jnp.float32)
    params = init_bcres_block(kp, in_channels, out_channels, kernel_size, num_blks)

    fwd = jax.jit(functools.partial(
        bcres_block_forward, in_channels=in_channels, out_channels=out_channels,
        kernel_size=kernel_size, stride=stride, num_blks=num_blks, idx=idx))
    out = jax.block_until_ready(fwd(params, x))

    assert out.shape == (batch, out_channels, 10, time), out.shape
    assert bool(jnp.all(jnp.isfinite(out)))

    ref = bcres_block_ref(params, x, kernel_size, stride, idx)
    max_err = float(jnp.max(jnp.abs(out - ref)))
    assert bool(jnp.allclose(out, ref, rtol=2e-2, atol=2e-2)), max_err

    print("KERNEL_OK")
</pallas_src>

<mosaic_0001>
module attributes {stable_mosaic.version = 11 : i64} {
  func.func @_bcres_chain_kernel(%arg0: i32, %arg1: memref<1x160x128xf32, #tpu.memory_space<vmem>>, %arg2: memref<240x160xf32, #tpu.memory_space<vmem>>, %arg3: memref<240x1xf32, #tpu.memory_space<vmem>>, %arg4: memref<240x1xf32, #tpu.memory_space<vmem>>, %arg5: memref<120x240xf32, #tpu.memory_space<vmem>>, %arg6: memref<120x1xf32, #tpu.memory_space<vmem>>, %arg7: memref<12x3xf32, #tpu.memory_space<vmem>>, %arg8: memref<12x1xf32, #tpu.memory_space<vmem>>, %arg9: memref<120x12xf32, #tpu.memory_space<vmem>>, %arg10: memref<1x120x120xf32, #tpu.memory_space<vmem>>, %arg11: memref<1x120x1xf32, #tpu.memory_space<vmem>>, %arg12: memref<1x12x3xf32, #tpu.memory_space<vmem>>, %arg13: memref<1x12x1xf32, #tpu.memory_space<vmem>>, %arg14: memref<1x120x12xf32, #tpu.memory_space<vmem>>, %arg15: memref<12x120xf32, #tpu.memory_space<vmem>>, %arg16: memref<3x128x128xf32, #tpu.memory_space<vmem>>, %arg17: memref<1x120x128xf32, #tpu.memory_space<vmem>>) attributes {dimension_semantics = [#tpu.dimension_semantics<parallel>], iteration_bounds = array<i64: 1>, scalar_prefetch = 0 : i64, scratch_operands = 0 : i64, tpu.core_type = #tpu.core_type<tc>, window_params = [{transform_indices = @transform_0, window_bounds = array<i64: 1, 160, 128>}, {pipeline_mode = #tpu.pipeline_mode<synchronous>, transform_indices = @transform_1, window_bounds = array<i64: 240, 160>}, {pipeline_mode = #tpu.pipeline_mode<synchronous>, transform_indices = @transform_2, window_bounds = array<i64: 240, 1>}, {pipeline_mode = #tpu.pipeline_mode<synchronous>, transform_indices = @transform_3, window_bounds = array<i64: 240, 1>}, {pipeline_mode = #tpu.pipeline_mode<synchronous>, transform_indices = @transform_4, window_bounds = array<i64: 120, 240>}, {pipeline_mode = #tpu.pipeline_mode<synchronous>, transform_indices = @transform_5, window_bounds = array<i64: 120, 1>}, {pipeline_mode = #tpu.pipeline_mode<synchronous>, transform_indices = @transform_6, window_bounds = array<i64: 12, 3>}, {pipeline_mode = #tpu.pipeline_mode<synchronous>, transform_indices = @transform_7, window_bounds = array<i64: 12, 1>}, {pipeline_mode = #tpu.pipeline_mode<synchronous>, transform_indices = @transform_8, window_bounds = array<i64: 120, 12>}, {pipeline_mode = #tpu.pipeline_mode<synchronous>, transform_indices = @transform_9, window_bounds = array<i64: 1, 120, 120>}, {pipeline_mode = #tpu.pipeline_mode<synchronous>, transform_indices = @transform_10, window_bounds = array<i64: 1, 120, 1>}, {pipeline_mode = #tpu.pipeline_mode<synchronous>, transform_indices = @transform_11, window_bounds = array<i64: 1, 12, 3>}, {pipeline_mode = #tpu.pipeline_mode<synchronous>, transform_indices = @transform_12, window_bounds = array<i64: 1, 12, 1>}, {pipeline_mode = #tpu.pipeline_mode<synchronous>, transform_indices = @transform_13, window_bounds = array<i64: 1, 120, 12>}, {pipeline_mode = #tpu.pipeline_mode<synchronous>, transform_indices = @transform_14, window_bounds = array<i64: 12, 120>}, {pipeline_mode = #tpu.pipeline_mode<synchronous>, transform_indices = @transform_15, window_bounds = array<i64: 3, 128, 128>}, {transform_indices = @transform_16, window_bounds = array<i64: 1, 120, 128>}]} {
    %c0 = arith.constant 0 : index
    %c0_0 = arith.constant 0 : index
    %c0_1 = arith.constant 0 : index
    %0 = vector.load %arg1[%c0, %c0_0, %c0_1] : memref<1x160x128xf32, #tpu.memory_space<vmem>>, vector<1x160x128xf32>
    %1 = vector.shape_cast %0 : vector<1x160x128xf32> to vector<160x128xf32>
    %c0_2 = arith.constant 0 : index
    %c0_3 = arith.constant 0 : index
    %2 = vector.load %arg2[%c0_2, %c0_3] : memref<240x160xf32, #tpu.memory_space<vmem>>, vector<240x160xf32>
    %cst = arith.constant dense<0.000000e+00> : vector<240x128xf32>
    %3 = tpu.matmul %2, %1, %cst {dimension_numbers = #tpu.dot_dimension_numbers<[1], [0], [0], [1], [0, 0, 1, 1], [], []>} : vector<240x160xf32>, vector<160x128xf32>, vector<240x128xf32> -> vector<240x128xf32>
    %c0_4 = arith.constant 0 : index
    %c0_5 = arith.constant 0 : index
    %4 = vector.load %arg3[%c0_4, %c0_5] : memref<240x1xf32, #tpu.memory_space<vmem>>, vector<240x1xf32>
    %5 = vector.broadcast %4 : vector<240x1xf32> to vector<240x128xf32>
    %6 = arith.mulf %3, %5 : vector<240x128xf32>
    %c0_6 = arith.constant 0 : index
    %c0_7 = arith.constant 0 : index
    %7 = vector.load %arg4[%c0_6, %c0_7] : memref<240x1xf32, #tpu.memory_space<vmem>>, vector<240x1xf32>
    %8 = vector.broadcast %7 : vector<240x1xf32> to vector<240x128xf32>
    %9 = arith.addf %6, %8 : vector<240x128xf32>
    %cst_8 = arith.constant 0.000000e+00 : f32
    %10 = vector.broadcast %cst_8 : f32 to vector<240x128xf32>
    %11 = arith.maximumf %9, %10 : vector<240x128xf32>
    %c0_9 = arith.constant 0 : index
    %c0_10 = arith.constant 0 : index
    %12 = vector.load %arg15[%c0_9, %c0_10] : memref<12x120xf32, #tpu.memory_space<vmem>>, vector<12x120xf32>
    %c0_11 = arith.constant 0 : index
    %c0_12 = arith.constant 0 : index
    %c0_13 = arith.constant 0 : index
    %13 = vector.load %arg16[%c0_11, %c0_12, %c0_13] : memref<3x128x128xf32, #tpu.memory_space<vmem>>, vector<3x128x128xf32>
    %c0_14 = arith.constant 0 : index
    %c0_15 = arith.constant 0 : index
    %14 = vector.load %arg5[%c0_14, %c0_15] : memref<120x240xf32, #tpu.memory_space<vmem>>, vector<120x240xf32>
    %c0_16 = arith.constant 0 : index
    %c0_17 = arith.constant 0 : index
    %15 = vector.load %arg6[%c0_16, %c0_17] : memref<120x1xf32, #tpu.memory_space<vmem>>, vector<120x1xf32>
    %c0_18 = arith.constant 0 : index
    %c0_19 = arith.constant 0 : index
    %16 = vector.load %arg7[%c0_18, %c0_19] : memref<12x3xf32, #tpu.memory_space<vmem>>, vector<12x3xf32>
    %c0_20 = arith.constant 0 : index
    %c0_21 = arith.constant 0 : index
    %17 = vector.load %arg8[%c0_20, %c0_21] : memref<12x1xf32, #tpu.memory_space<vmem>>, vector<12x1xf32>
    %c0_22 = arith.constant 0 : index
    %c0_23 = arith.constant 0 : index
    %18 = vector.load %arg9[%c0_22, %c0_23] : memref<120x12xf32, #tpu.memory_space<vmem>>, vector<120x12xf32>
    %cst_24 = arith.constant dense<0.000000e+00> : vector<120x128xf32>
    %19 = tpu.matmul %14, %11, %cst_24 {dimension_numbers = #tpu.dot_dimension_numbers<[1], [0], [0], [1], [0, 0, 1, 1], [], []>} : vector<120x240xf32>, vector<240x128xf32>, vector<120x128xf32> -> vector<120x128xf32>
    %20 = vector.broadcast %15 : vector<120x1xf32> to vector<120x128xf32>
    %21 = arith.addf %19, %20 : vector<120x128xf32>
    %cst_25 = arith.constant dense<0.000000e+00> : vector<12x128xf32>
    %22 = tpu.matmul %12, %21, %cst_25 {dimension_numbers = #tpu.dot_dimension_numbers<[1], [0], [0], [1], [0, 0, 1, 1], [], []>} : vector<12x120xf32>, vector<120x128xf32>, vector<12x128xf32> -> vector<12x128xf32>
    %cst_26 = arith.constant 0.000000e+00 : f32
    %23 = vector.broadcast %cst_26 : f32 to vector<12x128xf32>
    %24 = vector.extract_strided_slice %13 {offsets = [0, 0, 0], sizes = [1, 128, 128], strides = [1, 1, 1]} : vector<3x128x128xf32> to vector<1x128x128xf32>
    %25 = vector.shape_cast %24 : vector<1x128x128xf32> to vector<128x128xf32>
    %cst_27 = arith.constant dense<0.000000e+00> : vector<12x128xf32>
    %26 = tpu.matmul %22, %25, %cst_27 {dimension_numbers = #tpu.dot_dimension_numbers<[1], [0], [0], [1], [0, 0, 1, 1], [], []>} : vector<12x128xf32>, vector<128x128xf32>, vector<12x128xf32> -> vector<12x128xf32>
    %27 = vector.extract_strided_slice %16 {offsets = [0, 0], sizes = [12, 1], strides = [1, 1]} : vector<12x3xf32> to vector<12x1xf32>
    %28 = vector.broadcast %27 : vector<12x1xf32> to vector<12x128xf32>
    %29 = arith.mulf %28, %26 : vector<12x128xf32>
    %30 = arith.addf %23, %29 : vector<12x128xf32>
    %31 = vector.extract_strided_slice %13 {offsets = [1, 0, 0], sizes = [1, 128, 128], strides = [1, 1, 1]} : vector<3x128x128xf32> to vector<1x128x128xf32>
    %32 = vector.shape_cast %31 : vector<1x128x128xf32> to vector<128x128xf32>
    %cst_28 = arith.constant dense<0.000000e+00> : vector<12x128xf32>
    %33 = tpu.matmul %22, %32, %cst_28 {dimension_numbers = #tpu.dot_dimension_numbers<[1], [0], [0], [1], [0, 0, 1, 1], [], []>} : vector<12x128xf32>, vector<128x128xf32>, vector<12x128xf32> -> vector<12x128xf32>
    %34 = vector.extract_strided_slice %16 {offsets = [0, 1], sizes = [12, 1], strides = [1, 1]} : vector<12x3xf32> to vector<12x1xf32>
    %35 = vector.broadcast %34 : vector<12x1xf32> to vector<12x128xf32>
    %36 = arith.mulf %35, %33 : vector<12x128xf32>
    %37 = arith.addf %30, %36 : vector<12x128xf32>
    %38 = vector.extract_strided_slice %13 {offsets = [2, 0, 0], sizes = [1, 128, 128], strides = [1, 1, 1]} : vector<3x128x128xf32> to vector<1x128x128xf32>
    %39 = vector.shape_cast %38 : vector<1x128x128xf32> to vector<128x128xf32>
    %cst_29 = arith.constant dense<0.000000e+00> : vector<12x128xf32>
    %40 = tpu.matmul %22, %39, %cst_29 {dimension_numbers = #tpu.dot_dimension_numbers<[1], [0], [0], [1], [0, 0, 1, 1], [], []>} : vector<12x128xf32>, vector<128x128xf32>, vector<12x128xf32> -> vector<12x128xf32>
    %41 = vector.extract_strided_slice %16 {offsets = [0, 2], sizes = [12, 1], strides = [1, 1]} : vector<12x3xf32> to vector<12x1xf32>
    %42 = vector.broadcast %41 : vector<12x1xf32> to vector<12x128xf32>
    %43 = arith.mulf %42, %40 : vector<12x128xf32>
    %44 = arith.addf %37, %43 : vector<12x128xf32>
    %45 = vector.broadcast %17 : vector<12x1xf32> to vector<12x128xf32>
    %46 = arith.addf %44, %45 : vector<12x128xf32>
    %cst_30 = arith.constant 0.000000e+00 : f32
    %47 = vector.broadcast %cst_30 : f32 to vector<12x128xf32>
    %48 = arith.subf %47, %46 : vector<12x128xf32>
    %49 = math.exp %48 : vector<12x128xf32>
    %cst_31 = arith.constant 1.000000e+00 : f32
    %50 = vector.broadcast %cst_31 : f32 to vector<12x128xf32>
    %51 = arith.addf %50, %49 : vector<12x128xf32>
    %52 = tpu.reciprocal %51 {approx = true} : vector<12x128xf32> -> vector<12x128xf32>
    %53 = arith.mulf %46, %52 : vector<12x128xf32>
    %cst_32 = arith.constant dense<0.000000e+00> : vector<120x128xf32>
    %54 = tpu.matmul %18, %53, %cst_32 {dimension_numbers = #tpu.dot_dimension_numbers<[1], [0], [0], [1], [0, 0, 1, 1], [], []>} : vector<120x12xf32>, vector<12x128xf32>, vector<120x128xf32> -> vector<120x128xf32>
    %55 = arith.addf %21, %54 : vector<120x128xf32>
    %cst_33 = arith.constant 0.000000e+00 : f32
    %56 = vector.broadcast %cst_33 : f32 to vector<120x128xf32>
    %57 = arith.maximumf %55, %56 : vector<120x128xf32>
    %c0_34 = arith.constant 0 : index
    %c0_35 = arith.constant 0 : index
    %c0_36 = arith.constant 0 : index
    %58 = vector.load %arg10[%c0_34, %c0_35, %c0_36] : memref<1x120x120xf32, #tpu.memory_space<vmem>>, vector<1x120x120xf32>
    %59 = vector.shape_cast %58 : vector<1x120x120xf32> to vector<120x120xf32>
    %c0_37 = arith.constant 0 : index
    %c0_38 = arith.constant 0 : index
    %c0_39 = arith.constant 0 : index
    %60 = vector.load %arg11[%c0_37, %c0_38, %c0_39] : memref<1x120x1xf32, #tpu.memory_space<vmem>>, vector<1x120x1xf32>
    %61 = vector.shape_cast %60 : vector<1x120x1xf32> to vector<120x1xf32>
    %c0_40 = arith.constant 0 : index
    %c0_41 = arith.constant 0 : index
    %c0_42 = arith.constant 0 : index
    %62 = vector.load %arg12[%c0_40, %c0_41, %c0_42] : memref<1x12x3xf32, #tpu.memory_space<vmem>>, vector<1x12x3xf32>
    %63 = vector.shape_cast %62 : vector<1x12x3xf32> to vector<12x3xf32>
    %c0_43 = arith.constant 0 : index
    %c0_44 = arith.constant 0 : index
    %c0_45 = arith.constant 0 : index
    %64 = vector.load %arg13[%c0_43, %c0_44, %c0_45] : memref<1x12x1xf32, #tpu.memory_space<vmem>>, vector<1x12x1xf32>
    %65 = vector.shape_cast %64 : vector<1x12x1xf32> to vector<12x1xf32>
    %c0_46 = arith.constant 0 : index
    %c0_47 = arith.constant 0 : index
    %c0_48 = arith.constant 0 : index
    %66 = vector.load %arg14[%c0_46, %c0_47, %c0_48] : memref<1x120x12xf32, #tpu.memory_space<vmem>>, vector<1x120x12xf32>
    %67 = vector.shape_cast %66 : vector<1x120x12xf32> to vector<120x12xf32>
    %cst_49 = arith.constant dense<0.000000e+00> : vector<120x128xf32>
    %68 = tpu.matmul %59, %57, %cst_49 {dimension_numbers = #tpu.dot_dimension_numbers<[1], [0], [0], [1], [0, 0, 1, 1], [], []>} : vector<120x120xf32>, vector<120x128xf32>, vector<120x128xf32> -> vector<120x128xf32>
    %69 = vector.broadcast %61 : vector<120x1xf32> to vector<120x128xf32>
    %70 = arith.addf %68, %69 : vector<120x128xf32>
    %cst_50 = arith.constant dense<0.000000e+00> : vector<12x128xf32>
    %71 = tpu.matmul %12, %70, %cst_50 {dimension_numbers = #tpu.dot_dimension_numbers<[1], [0], [0], [1], [0, 0, 1, 1], [], []>} : vector<12x120xf32>, vector<120x128xf32>, vector<12x128xf32> -> vector<12x128xf32>
    %cst_51 = arith.constant 0.000000e+00 : f32
    %72 = vector.broadcast %cst_51 : f32 to vector<12x128xf32>
    %73 = vector.extract_strided_slice %13 {offsets = [0, 0, 0], sizes = [1, 128, 128], strides = [1, 1, 1]} : vector<3x128x128xf32> to vector<1x128x128xf32>
    %74 = vector.shape_cast %73 : vector<1x128x128xf32> to vector<128x128xf32>
    %cst_52 = arith.constant dense<0.000000e+00> : vector<12x128xf32>
    %75 = tpu.matmul %71, %74, %cst_52 {dimension_numbers = #tpu.dot_dimension_numbers<[1], [0], [0], [1], [0, 0, 1, 1], [], []>} : vector<12x128xf32>, vector<128x128xf32>, vector<12x128xf32> -> vector<12x128xf32>
    %76 = vector.extract_strided_slice %63 {offsets = [0, 0], sizes = [12, 1], strides = [1, 1]} : vector<12x3xf32> to vector<12x1xf32>
    %77 = vector.broadcast %76 : vector<12x1xf32> to vector<12x128xf32>
    %78 = arith.mulf %77, %75 : vector<12x128xf32>
    %79 = arith.addf %72, %78 : vector<12x128xf32>
    %80 = vector.extract_strided_slice %13 {offsets = [1, 0, 0], sizes = [1, 128, 128], strides = [1, 1, 1]} : vector<3x128x128xf32> to vector<1x128x128xf32>
    %81 = vector.shape_cast %80 : vector<1x128x128xf32> to vector<128x128xf32>
    %cst_53 = arith.constant dense<0.000000e+00> : vector<12x128xf32>
    %82 = tpu.matmul %71, %81, %cst_53 {dimension_numbers = #tpu.dot_dimension_numbers<[1], [0], [0], [1], [0, 0, 1, 1], [], []>} : vector<12x128xf32>, vector<128x128xf32>, vector<12x128xf32> -> vector<12x128xf32>
    %83 = vector.extract_strided_slice %63 {offsets = [0, 1], sizes = [12, 1], strides = [1, 1]} : vector<12x3xf32> to vector<12x1xf32>
    %84 = vector.broadcast %83 : vector<12x1xf32> to vector<12x128xf32>
    %85 = arith.mulf %84, %82 : vector<12x128xf32>
    %86 = arith.addf %79, %85 : vector<12x128xf32>
    %87 = vector.extract_strided_slice %13 {offsets = [2, 0, 0], sizes = [1, 128, 128], strides = [1, 1, 1]} : vector<3x128x128xf32> to vector<1x128x128xf32>
    %88 = vector.shape_cast %87 : vector<1x128x128xf32> to vector<128x128xf32>
    %cst_54 = arith.constant dense<0.000000e+00> : vector<12x128xf32>
    %89 = tpu.matmul %71, %88, %cst_54 {dimension_numbers = #tpu.dot_dimension_numbers<[1], [0], [0], [1], [0, 0, 1, 1], [], []>} : vector<12x128xf32>, vector<128x128xf32>, vector<12x128xf32> -> vector<12x128xf32>
    %90 = vector.extract_strided_slice %63 {offsets = [0, 2], sizes = [12, 1], strides = [1, 1]} : vector<12x3xf32> to vector<12x1xf32>
    %91 = vector.broadcast %90 : vector<12x1xf32> to vector<12x128xf32>
    %92 = arith.mulf %91, %89 : vector<12x128xf32>
    %93 = arith.addf %86, %92 : vector<12x128xf32>
    %94 = vector.broadcast %65 : vector<12x1xf32> to vector<12x128xf32>
    %95 = arith.addf %93, %94 : vector<12x128xf32>
    %cst_55 = arith.constant 0.000000e+00 : f32
    %96 = vector.broadcast %cst_55 : f32 to vector<12x128xf32>
    %97 = arith.subf %96, %95 : vector<12x128xf32>
    %98 = math.exp %97 : vector<12x128xf32>
    %cst_56 = arith.constant 1.000000e+00 : f32
    %99 = vector.broadcast %cst_56 : f32 to vector<12x128xf32>
    %100 = arith.addf %99, %98 : vector<12x128xf32>
    %101 = tpu.reciprocal %100 {approx = true} : vector<12x128xf32> -> vector<12x128xf32>
    %102 = arith.mulf %95, %101 : vector<12x128xf32>
    %cst_57 = arith.constant dense<0.000000e+00> : vector<120x128xf32>
    %103 = tpu.matmul %67, %102, %cst_57 {dimension_numbers = #tpu.dot_dimension_numbers<[1], [0], [0], [1], [0, 0, 1, 1], [], []>} : vector<120x12xf32>, vector<12x128xf32>, vector<120x128xf32> -> vector<120x128xf32>
    %104 = arith.addf %70, %103 : vector<120x128xf32>
    %105 = arith.addf %104, %57 : vector<120x128xf32>
    %cst_58 = arith.constant 0.000000e+00 : f32
    %106 = vector.broadcast %cst_58 : f32 to vector<120x128xf32>
    %107 = arith.maximumf %105, %106 : vector<120x128xf32>
    %c0_59 = arith.constant 0 : index
    %c0_60 = arith.constant 0 : index
    %c0_61 = arith.constant 0 : index
    %108 = vector.load %arg17[%c0_59, %c0_60, %c0_61] : memref<1x120x128xf32, #tpu.memory_space<vmem>>, vector<1x120x128xf32>
    %109 = vector.shape_cast %108 : vector<1x120x128xf32> to vector<120x128xf32>
    %110 = vector.shape_cast %107 : vector<120x128xf32> to vector<1x120x128xf32>
    tpu.vector_store %arg17[%c0_59, %c0_60, %c0_61], %110 {strides = array<i32>} : memref<1x120x128xf32, #tpu.memory_space<vmem>>, vector<1x120x128xf32>,
    return
  }
  func.func @transform_0(%arg0: i32) -> (i32, i32, i32) {
    %c0_i32 = arith.constant 0 : i32
    %c0_i32_0 = arith.constant 0 : i32
    %c0_i32_1 = arith.constant 0 : i32
    return %arg0, %c0_i32, %c0_i32_0 : i32, i32, i32
  }
  func.func @transform_1(%arg0: i32) -> (i32, i32) {
    %c0_i32 = arith.constant 0 : i32
    %c0_i32_0 = arith.constant 0 : i32
    %c0_i32_1 = arith.constant 0 : i32
    return %c0_i32, %c0_i32_0 : i32, i32
  }
  func.func @transform_2(%arg0: i32) -> (i32, i32) {
    %c0_i32 = arith.constant 0 : i32
    %c0_i32_0 = arith.constant 0 : i32
    %c0_i32_1 = arith.constant 0 : i32
    return %c0_i32, %c0_i32_0 : i32, i32
  }
  func.func @transform_3(%arg0: i32) -> (i32, i32) {
    %c0_i32 = arith.constant 0 : i32
    %c0_i32_0 = arith.constant 0 : i32
    %c0_i32_1 = arith.constant 0 : i32
    return %c0_i32, %c0_i32_0 : i32, i32
  }
  func.func @transform_4(%arg0: i32) -> (i32, i32) {
    %c0_i32 = arith.constant 0 : i32
    %c0_i32_0 = arith.constant 0 : i32
    %c0_i32_1 = arith.constant 0 : i32
    return %c0_i32, %c0_i32_0 : i32, i32
  }
  func.func @transform_5(%arg0: i32) -> (i32, i32) {
    %c0_i32 = arith.constant 0 : i32
    %c0_i32_0 = arith.constant 0 : i32
    %c0_i32_1 = arith.constant 0 : i32
    return %c0_i32, %c0_i32_0 : i32, i32
  }
  func.func @transform_6(%arg0: i32) -> (i32, i32) {
    %c0_i32 = arith.constant 0 : i32
    %c0_i32_0 = arith.constant 0 : i32
    %c0_i32_1 = arith.constant 0 : i32
    return %c0_i32, %c0_i32_0 : i32, i32
  }
  func.func @transform_7(%arg0: i32) -> (i32, i32) {
    %c0_i32 = arith.constant 0 : i32
    %c0_i32_0 = arith.constant 0 : i32
    %c0_i32_1 = arith.constant 0 : i32
    return %c0_i32, %c0_i32_0 : i32, i32
  }
  func.func @transform_8(%arg0: i32) -> (i32, i32) {
    %c0_i32 = arith.constant 0 : i32
    %c0_i32_0 = arith.constant 0 : i32
    %c0_i32_1 = arith.constant 0 : i32
    return %c0_i32, %c0_i32_0 : i32, i32
  }
  func.func @transform_9(%arg0: i32) -> (i32, i32, i32) {
    %c0_i32 = arith.constant 0 : i32
    %c0_i32_0 = arith.constant 0 : i32
    %c0_i32_1 = arith.constant 0 : i32
    %c0_i32_2 = arith.constant 0 : i32
    return %c0_i32, %c0_i32_0, %c0_i32_1 : i32, i32, i32
  }
  func.func @transform_10(%arg0: i32) -> (i32, i32, i32) {
    %c0_i32 = arith.constant 0 : i32
    %c0_i32_0 = arith.constant 0 : i32
    %c0_i32_1 = arith.constant 0 : i32
    %c0_i32_2 = arith.constant 0 : i32
    return %c0_i32, %c0_i32_0, %c0_i32_1 : i32, i32, i32
  }
  func.func @transform_11(%arg0: i32) -> (i32, i32, i32) {
    %c0_i32 = arith.constant 0 : i32
    %c0_i32_0 = arith.constant 0 : i32
    %c0_i32_1 = arith.constant 0 : i32
    %c0_i32_2 = arith.constant 0 : i32
    return %c0_i32, %c0_i32_0, %c0_i32_1 : i32, i32, i32
  }
  func.func @transform_12(%arg0: i32) -> (i32, i32, i32) {
    %c0_i32 = arith.constant 0 : i32
    %c0_i32_0 = arith.constant 0 : i32
    %c0_i32_1 = arith.constant 0 : i32
    %c0_i32_2 = arith.constant 0 : i32
    return %c0_i32, %c0_i32_0, %c0_i32_1 : i32, i32, i32
  }
  func.func @transform_13(%arg0: i32) -> (i32, i32, i32) {
    %c0_i32 = arith.constant 0 : i32
    %c0_i32_0 = arith.constant 0 : i32
    %c0_i32_1 = arith.constant 0 : i32
    %c0_i32_2 = arith.constant 0 : i32
    return %c0_i32, %c0_i32_0, %c0_i32_1 : i32, i32, i32
  }
  func.func @transform_14(%arg0: i32) -> (i32, i32) {
    %c0_i32 = arith.constant 0 : i32
    %c0_i32_0 = arith.constant 0 : i32
    %c0_i32_1 = arith.constant 0 : i32
    return %c0_i32, %c0_i32_0 : i32, i32
  }
  func.func @transform_15(%arg0: i32) -> (i32, i32, i32) {
    %c0_i32 = arith.constant 0 : i32
    %c0_i32_0 = arith.constant 0 : i32
    %c0_i32_1 = arith.constant 0 : i32
    %c0_i32_2 = arith.constant 0 : i32
    return %c0_i32, %c0_i32_0, %c0_i32_1 : i32, i32, i32
  }
  func.func @transform_16(%arg0: i32) -> (i32, i32, i32) {
    %c0_i32 = arith.constant 0 : i32
    %c0_i32_0 = arith.constant 0 : i32
    %c0_i32_1 = arith.constant 0 : i32
    return %arg0, %c0_i32, %c0_i32_0 : i32, i32, i32
  }
}

</mosaic_0001>

<bundles_post_ra>
// kernel: mul.68
= control target key start
LH: loop header
LB: loop body
LE: loop exit
PB: predicated region body
PF: predicated region fallthrough
CT: control target
= control target key end

     0   :  { %vm23_vm0 = vcmask 97280   ;;  %s93_s0 = inlined_call_operand.vmem [shape: f32[12,5,2], index: 0, kind: input, shape index: {}]   ;;  %s94_s1 = inlined_call_operand.vmem [shape: f32[12,10], index: 1, kind: output, shape index: {}]  }
   0x1   :  { %v45_v0 = vld [vmem:[%s93_s0 + $0x8] sm:$0x3]  ;;  %v46_v1 = vld [vmem:[%s93_s0 + $0x6] sm:$0x3]  ;;  %v47_v2 = vld [vmem:[%s93_s0 + $0x4] sm:$0x3] }
   0x2   :  { %7 = vst [vmem:[#allocation0 + $0x18] sm:$0x3] %v45_v0  ;;  %v48_v3 = vld [vmem:[%s93_s0 + $0x2] sm:$0x3]  ;;  %v20_v4 = vld [vmem:[%s93_s0] sm:$0x3] }
   0x3   :  { %11 = vst [vmem:[#allocation0 + $0x20] sm:$0x3] %v46_v1 }
   0x4   :  { %15 = vst [vmem:[#allocation0] sm:$0x3] %v47_v2 }
   0x5   :  { %19 = vst [vmem:[#allocation0 + $0x10] sm:$0x3] %v48_v3 }
   0x6   :  { %21 = vst [vmem:[#allocation0 + $0x8] sm:$0x3] %v20_v4 }
   0x9   :  { %v41_v5 = vld [vmem:[#allocation0 + $0x18] sm:$0x3]  }
   0xa   :  { %v36_v6 = vld [vmem:[#allocation0 + $0x20] sm:$0x3]   ;;  %52 = vst.msk [vmem:[%s94_s1 + $0x8] sm:$0x3] %vm23_vm0, %v41_v5  }
   0xb   :  { %v31_v7 = vld [vmem:[#allocation0] sm:$0x3]   ;;  %51 = vst.msk [vmem:[%s94_s1 + $0x6] sm:$0x3] %vm23_vm0, %v36_v6  }
   0xc   :  { %v26_v8 = vld [vmem:[#allocation0 + $0x10] sm:$0x3]   ;;  %50 = vst.msk [vmem:[%s94_s1 + $0x4] sm:$0x3] %vm23_vm0, %v31_v7  }
   0xd   :  { %v22_v9 = vld [vmem:[#allocation0 + $0x8] sm:$0x3]   ;;  %49 = vst.msk [vmem:[%s94_s1 + $0x2] sm:$0x3] %vm23_vm0, %v26_v8  }
   0xe   :  { %24 = vst.msk [vmem:[%s94_s1] sm:$0x3] %vm23_vm0, %v22_v9  }

// kernel: bcres_block_forward.1
= control target key start
LH: loop header
LB: loop body
LE: loop exit
PB: predicated region body
PF: predicated region fallthrough
CT: control target
= control target key end

     0   :  { %v4126_v0 = vmov 0   ;;  %vm133_vm0 = vcmask 261120   ;;  %vm1077_vm1 = vcmask 916480   ;;  %vm1247_vm2 = vcmask 982016   ;;  %s4108_s3 = inlined_call_operand.vmem [shape: f32[240,1], index: 3, kind: input, shape index: {}]   ;;  %s4109_s2 = inlined_call_operand.vmem [shape: f32[240,1], index: 2, kind: input, shape index: {}]   ;;  %s4110_s0 = inlined_call_operand.vmem [shape: f32[1,160,128], index: 0, kind: input, shape index: {}]   ;;  %s4111_s1 = inlined_call_operand.vmem [shape: f32[240,160], index: 1, kind: input, shape index: {}]   ;;  %s4112_s5 = inlined_call_operand.vmem [shape: f32[120,1], index: 5, kind: input, shape index: {}]   ;;  %s4113_s6 = inlined_call_operand.vmem [shape: f32[12,3], index: 6, kind: input, shape index: {}]   ;;  %s4114_s4 = inlined_call_operand.vmem [shape: f32[120,240], index: 4, kind: input, shape index: {}]   ;;  %s4115_s15 = inlined_call_operand.vmem [shape: f32[3,128,128], index: 15, kind: input, shape index: {}]   ;;  %s4116_s14 = inlined_call_operand.vmem [shape: f32[12,120], index: 14, kind: input, shape index: {}]   ;;  %s4117_s7 = inlined_call_operand.vmem [shape: f32[12,1], index: 7, kind: input, shape index: {}]   ;;  %s4118_s10 = inlined_call_operand.vmem [shape: f32[1,120,1], index: 10, kind: input, shape index: {}]   ;;  %s4119_s11 = inlined_call_operand.vmem [shape: f32[1,12,3], index: 11, kind: input, shape index: {}]   ;;  %s4120_s8 = inlined_call_operand.vmem [shape: f32[120,12], index: 8, kind: input, shape index: {}]   ;;  %s4121_s9 = inlined_call_operand.vmem [shape: f32[1,120,120], index: 9, kind: input, shape index: {}]   ;;  %s4122_s12 = inlined_call_operand.vmem [shape: f32[1,12,1], index: 12, kind: input, shape index: {}]   ;;  %s4123_s13 = inlined_call_operand.vmem [shape: f32[1,120,12], index: 13, kind: input, shape index: {}]   ;;  %s4124_s16 = inlined_call_operand.vmem [shape: f32[1,120,128], index: 16, kind: output, shape index: {}]  }
   0x1   :  { %4153 = sst [smem:[#allocation27_spill]] %s4108_s3  ;;  %2230 = vset.pattern.permute.xlu2 %v4126_v0  ;;  %2229 = vset.pattern.permute.xlu1 %v4126_v0  ;;  %v453_v3 = vld [vmem:[%s4109_s2 + $0x78] sm:$0xff]  ;;  %v67_v5 = vld [vmem:[%s4110_s0 + $0x70] sm:$0xff]  ;;  %v66_v6 = vld [vmem:[%s4110_s0 + $0x68] sm:$0xff]  ;;  %vm1454_vm3 = vcmask 1043456   ;;  %vm1408_vm4 = vcmask 97280  }
   0x2   :  { %s4154_s23 = sld [smem:[#allocation27_spill]]  ;;  %2228 = vset.pattern.permute.xlu0 %v4126_v0  ;;  %v68_v4 = vld [vmem:[%s4110_s0 + $0x78] sm:$0xff]  ;;  %v65_v7 = vld [vmem:[%s4110_s0 + $0x60] sm:$0xff]  ;;  %v451_v8 = vld [vmem:[%s4109_s2 + $0x68] sm:$0xff] }
   0x3   :  { %545 = vperm.xlu0 %2228, %v453_v3   ;;  %224 = vmatpush.msra.mxu0 %v68_v4  ;;  %v452_v9 = vld [vmem:[%s4109_s2 + $0x70] sm:$0xff]  ;;  %v450_v10 = vld [vmem:[%s4109_s2 + $0x60] sm:$0xff]  ;;  %v64_v11 = vld [vmem:[%s4110_s0 + $0x58] sm:$0xff] }
   0x4   :  { %v72_v12 = vld [vmem:[%s4110_s0 + $0x98] sm:$0xff]  ;;  %v63_v13 = vld [vmem:[%s4110_s0 + $0x50] sm:$0xff]  ;;  %v62_v15 = vld [vmem:[%s4110_s0 + $0x48] sm:$0xff] }
   0x5   :  { %225 = vmatpush.msra.mxu0 %v67_v5  ;;  %v71_v14 = vld [vmem:[%s4110_s0 + $0x90] sm:$0xff]  ;;  %343 = vmatpush.msra.mxu1 %v72_v12  ;;  %v70_v16 = vld [vmem:[%s4110_s0 + $0x88] sm:$0xff]  ;;  %v61_v17 = vld [vmem:[%s4110_s0 + $0x40] sm:$0xff] }
   0x6   :  { %2205 = vmatpush.msra.mxu3 %v72_v12  ;;  %v467_v19 = vld [vmem:[%s4109_s2 + $0xe8] sm:$0xff]  ;;  %v449_v20 = vld [vmem:[%s4109_s2 + $0x58] sm:$0xff]  ;;  %v69_v22 = vld [vmem:[%s4110_s0 + $0x80] sm:$0xff] }
   0x7   :  { %226 = vmatpush.msra.mxu0 %v66_v6  ;;  %344 = vmatpush.msra.mxu1 %v71_v14  ;;  %v60_v21 = vld [vmem:[%s4110_s0 + $0x38] sm:$0xff]  ;;  %v74_v23 = vld [vmem:[%s4111_s1 + $0x8] sm:$0xff]  ;;  %v59_v24 = vld [vmem:[%s4110_s0 + $0x30] sm:$0xff] }
   0x8   :  { %v663_v1 = vld [vmem:[%s4154_s23 + $0x78] sm:$0xff]  ;;  %v662_v2 = vld [vmem:[%s4154_s23 + $0x70] sm:$0xff]  ;;  %v661_v18 = vld [vmem:[%s4154_s23 + $0x68] sm:$0xff]  ;;  %2206 = vmatpush.msra.mxu3 %v71_v14 }
   0x9   :  { %755 = vperm.xlu1 %2229, %v663_v1   ;;  %750 = vperm.xlu2 %2230, %v662_v2   ;;  %v58_v25 = vld [vmem:[%s4110_s0 + $0x28] sm:$0xff]  ;;  %v57_v26 = vld [vmem:[%s4110_s0 + $0x20] sm:$0xff]  ;;  %v56_v30 = vld [vmem:[%s4110_s0 + $0x18] sm:$0xff] }
   0xa   :  { %227 = vmatpush.msra.mxu0 %v65_v7  ;;  %345 = vmatpush.msra.mxu1 %v70_v16  ;;  %v660_v27 = vld [vmem:[%s4154_s23 + $0x60] sm:$0xff]  ;;  %v677_v29 = vld [vmem:[%s4154_s23 + $0xe8] sm:$0xff]  ;;  %v76_v31 = vld [vmem:[%s4111_s1 + $0x18] sm:$0xff] }
   0xb   :  { %540 = vperm.xlu0 %2228, %v452_v9   ;;  %2207 = vmatpush.msra.mxu3 %v70_v16  ;;  %v466_v28 = vld [vmem:[%s4109_s2 + $0xe0] sm:$0xff]  ;;  %v55_v32 = vld [vmem:[%s4110_s0 + $0x10] sm:$0xff]  ;;  %v54_v33 = vld [vmem:[%s4110_s0 + $0x8] sm:$0xff] }
   0xc   :  { %228 = vmatpush.msra.mxu0 %v64_v11  ;;  %346 = vmatpush.msra.mxu1 %v69_v22  ;;  %v53_v34 = vld [vmem:[%s4110_s0] sm:$0xff]  ;;  %v465_v35 = vld [vmem:[%s4109_s2 + $0xd8] sm:$0xff]  ;;  %v448_v38 = vld [vmem:[%s4109_s2 + $0x50] sm:$0xff] }
   0xd   :  { %2109 = vmatmul.msk.f32.vlgmr.msra.gmra.mxu1 %vm133_vm0, %v74_v23  ;;  %2208 = vmatpush.msra.mxu3 %v69_v22  ;;  %v73_v36 = vld [vmem:[%s4111_s1] sm:$0xff]  ;;  %v659_v37 = vld [vmem:[%s4154_s23 + $0x58] sm:$0xff]  ;;  %v78_v39 = vld [vmem:[%s4111_s1 + $0x28] sm:$0xff] }
   0xe   :  { %229 = vmatpush.msra.mxu0 %v63_v13  ;;  %v447_v40 = vld [vmem:[%s4109_s2 + $0x48] sm:$0xff]  ;;  %v75_v41 = vld [vmem:[%s4111_s1 + $0x10] sm:$0xff]  ;;  %v676_v43 = vld [vmem:[%s4154_s23 + $0xe0] sm:$0xff] }
   0xf   :  { %v464_v42 = vld [vmem:[%s4109_s2 + $0xd0] sm:$0xff]  ;;  %v80_v44 = vld [vmem:[%s4111_s1 + $0x38] sm:$0xff]  ;;  %v77_v46 = vld [vmem:[%s4111_s1 + $0x20] sm:$0xff] }
  0x10   :  { %230 = vmatpush.msra.mxu0 %v62_v15  ;;  %v675_v45 = vld [vmem:[%s4154_s23 + $0xd8] sm:$0xff]  ;;  %v446_v47 = vld [vmem:[%s4109_s2 + $0x40] sm:$0xff]  ;;  %v658_v48 = vld [vmem:[%s4154_s23 + $0x50] sm:$0xff] }
  0x11   :  { %535 = vperm.xlu1 %2229, %v451_v8   ;;  %530 = vperm.xlu2 %2230, %v450_v10   ;;  %v82_v49 = vld [vmem:[%s4111_s1 + $0x48] sm:$0xff]  ;;  %v79_v51 = vld [vmem:[%s4111_s1 + $0x30] sm:$0xff]  ;;  %v84_v54 = vld [vmem:[%s4111_s1 + $0x58] sm:$0xff] }
  0x12   :  { %231 = vmatpush.msra.mxu0 %v61_v17  ;;  %v657_v50 = vld [vmem:[%s4154_s23 + $0x48] sm:$0xff]  ;;  %v674_v52 = vld [vmem:[%s4154_s23 + $0xd0] sm:$0xff]  ;;  %v462_v55 = vld [vmem:[%s4109_s2 + $0xc0] sm:$0xff] }
  0x13   :  { %615 = vperm.xlu0 %2228, %v467_v19   ;;  %v463_v53 = vld [vmem:[%s4109_s2 + $0xc8] sm:$0xff]  ;;  %v81_v56 = vld [vmem:[%s4111_s1 + $0x40] sm:$0xff]  ;;  %v445_v58 = vld [vmem:[%s4109_s2 + $0x38] sm:$0xff] }
  0x14   :  { %232 = vmatpush.msra.mxu0 %v60_v21  ;;  %v656_v57 = vld [vmem:[%s4154_s23 + $0x40] sm:$0xff]  ;;  %v86_v59 = vld [vmem:[%s4111_s1 + $0x68] sm:$0xff]  ;;  %v444_v60 = vld [vmem:[%s4109_s2 + $0x30] sm:$0xff] }
  0x15   :  { %2110 = vmatmul.msk.f32.gmra.mxu1 %vm133_vm0, %v76_v31  ;;  %v83_v61 = vld [vmem:[%s4111_s1 + $0x50] sm:$0xff]  ;;  %v461_v62 = vld [vmem:[%s4109_s2 + $0xb8] sm:$0xff]  ;;  %v673_v63 = vld [vmem:[%s4154_s23 + $0xc8] sm:$0xff] }
  0x16   :  { %233 = vmatpush.msra.mxu0 %v59_v24  ;;  %v88_v1 = vld [vmem:[%s4111_s1 + $0x78] sm:$0xff]  ;;  %v672_v2 = vld [vmem:[%s4154_s23 + $0xc0] sm:$0xff]  ;;  %v443_v4 = vld [vmem:[%s4109_s2 + $0x28] sm:$0xff] }
  0x17   :  { %v85_v3 = vld [vmem:[%s4111_s1 + $0x60] sm:$0xff]  ;;  %v655_v5 = vld [vmem:[%s4154_s23 + $0x38] sm:$0xff]  ;;  %v90_v6 = vld [vmem:[%s4111_s1 + $0x88] sm:$0xff] }
  0x18   :  { %234 = vmatpush.msra.mxu0 %v58_v25  ;;  %v654_v7 = vld [vmem:[%s4154_s23 + $0x30] sm:$0xff]  ;;  %v671_v9 = vld [vmem:[%s4154_s23 + $0xb8] sm:$0xff]  ;;  %v459_v12 = vld [vmem:[%s4109_s2 + $0xa8] sm:$0xff] }
  0x19   :  { %745 = vperm.xlu1 %2229, %v661_v18   ;;  %525 = vperm.xlu2 %2230, %v449_v20   ;;  %v87_v8 = vld [vmem:[%s4111_s1 + $0x70] sm:$0xff]  ;;  %v92_v11 = vld [vmem:[%s4111_s1 + $0x98] sm:$0xff]  ;;  %v89_v13 = vld [vmem:[%s4111_s1 + $0x80] sm:$0xff] }
  0x1a   :  { %235 = vmatpush.msra.mxu0 %v57_v26  ;;  %v460_v10 = vld [vmem:[%s4109_s2 + $0xb0] sm:$0xff]  ;;  %v653_v14 = vld [vmem:[%s4154_s23 + $0x28] sm:$0xff]  ;;  %v442_v15 = vld [vmem:[%s4109_s2 + $0x20] sm:$0xff] }
  0x1b   :  { %610 = vperm.xlu0 %2228, %v466_v28   ;;  %v94_v16 = vld [vmem:[%s4111_s1 + $0xa8] sm:$0xff]  ;;  %v441_v17 = vld [vmem:[%s4109_s2 + $0x18] sm:$0xff]  ;;  %v91_v18 = vld [vmem:[%s4111_s1 + $0x90] sm:$0xff] }
  0x1c   :  { %236 = vmatpush.msra.mxu0 %v56_v30  ;;  %v458_v19 = vld [vmem:[%s4109_s2 + $0xa0] sm:$0xff]  ;;  %v670_v20 = vld [vmem:[%s4154_s23 + $0xb0] sm:$0xff]  ;;  %v96_v21 = vld [vmem:[%s4111_s1 + $0xb8] sm:$0xff] }
  0x1d   :  { %2111 = vmatmul.msk.f32.gmra.mxu1 %vm133_vm0, %v78_v39  ;;  %v669_v22 = vld [vmem:[%s4154_s23 + $0xa8] sm:$0xff]  ;;  %v93_v23 = vld [vmem:[%s4111_s1 + $0xa0] sm:$0xff]  ;;  %v440_v24 = vld [vmem:[%s4109_s2 + $0x10] sm:$0xff] }
  0x1e   :  { %237 = vmatpush.msra.mxu0 %v55_v32  ;;  %v652_v25 = vld [vmem:[%s4154_s23 + $0x20] sm:$0xff]  ;;  %v98_v26 = vld [vmem:[%s4111_s1 + $0xc8] sm:$0xff]  ;;  %v651_v28 = vld [vmem:[%s4154_s23 + $0x18] sm:$0xff] }
  0x1f   :  { %v668_v30 = vld [vmem:[%s4154_s23 + $0xa0] sm:$0xff]  ;;  %v457_v31 = vld [vmem:[%s4109_s2 + $0x98] sm:$0xff] }
  0x20   :  { %238 = vmatpush.msra.mxu0 %v54_v33  ;;  %v100_v32 = vld [vmem:[%s4111_s1 + $0xd8] sm:$0xff]  ;;  %v456_v33 = vld [vmem:[%s4109_s2 + $0x90] sm:$0xff]  ;;  %v438_v39 = vld [vmem:[%s4109_s2] sm:$0xff] }
  0x21   :  { %740 = vperm.xlu1 %2229, %v660_v27   ;;  %825 = vperm.xlu2 %2230, %v677_v29   ;;  %v95_v29 = vld [vmem:[%s4111_s1 + $0xb0] sm:$0xff] }
  0x22   :  { %239 = vmatpush.msra.mxu0 %v53_v34  ;;  %v97_v34 = vld [vmem:[%s4111_s1 + $0xc0] sm:$0xff] }
  0x23   :  { %240 = vmatmul.f32.vlgmr.msra.gmra.mxu0 %v73_v36  ;;  %520 = vperm.xlu0 %2228, %v448_v38   ;;  %v102_v38 = vld [vmem:[%s4111_s1 + $0xe8] sm:$0xff] }
  0x25   :  { %2112 = vmatmul.msk.f32.gmra.mxu1 %vm133_vm0, %v80_v44  ;;  %v104_v44 = vld [vmem:[%s4111_s1 + $0xf8] sm:$0xff] }
  0x29   :  { %605 = vperm.xlu1 %2229, %v465_v35   ;;  %735 = vperm.xlu2 %2230, %v659_v37   ;;  %v650_v35 = vld [vmem:[%s4154_s23 + $0x10] sm:$0xff]  ;;  %v439_v37 = vld [vmem:[%s4109_s2 + $0x8] sm:$0xff] }
  0x2b   :  { %243 = vmatmul.f32.gmra.mxu0 %v75_v41  ;;  %820 = vperm.xlu0 %2228, %v676_v43   ;;  %v455_v41 = vld [vmem:[%s4109_s2 + $0x88] sm:$0xff] }
  0x2d   :  { %2113 = vmatmul.msk.f32.gmra.mxu1 %vm133_vm0, %v82_v49  ;;  %v649_v49 = vld [vmem:[%s4154_s23 + $0x8] sm:$0xff] }
  0x31   :  { %515 = vperm.xlu1 %2229, %v447_v40   ;;  %600 = vperm.xlu2 %2230, %v464_v42   ;;  %v99_v40 = vld [vmem:[%s4111_s1 + $0xd0] sm:$0xff]  ;;  %v667_v42 = vld [vmem:[%s4154_s23 + $0x98] sm:$0xff] }
  0x33   :  { %246 = vmatmul.f32.gmra.mxu0 %v77_v46  ;;  %730 = vperm.xlu0 %2228, %v658_v48   ;;  %v666_v46 = vld [vmem:[%s4154_s23 + $0x90] sm:$0xff]  ;;  %v454_v48 = vld [vmem:[%s4109_s2 + $0x80] sm:$0xff] }
  0x35   :  { %2114 = vmatmul.msk.f32.gmra.mxu1 %vm133_vm0, %v84_v54 }
  0x39   :  { %815 = vperm.xlu1 %2229, %v675_v45   ;;  %510 = vperm.xlu2 %2230, %v446_v47   ;;  %v101_v47 = vld [vmem:[%s4111_s1 + $0xe0] sm:$0xff] }
  0x3b   :  { %249 = vmatmul.f32.gmra.mxu0 %v79_v51  ;;  %595 = vperm.xlu0 %2228, %v463_v53  }
  0x3d   :  { %2115 = vmatmul.msk.f32.gmra.mxu1 %vm133_vm0, %v86_v59 }
  0x41   :  { %725 = vperm.xlu1 %2229, %v657_v50   ;;  %810 = vperm.xlu2 %2230, %v674_v52   ;;  %v106_v52 = vld [vmem:[%s4111_s1 + $0x108] sm:$0xff] }
  0x43   :  { %252 = vmatmul.f32.gmra.mxu0 %v81_v56  ;;  %505 = vperm.xlu0 %2228, %v445_v58   ;;  %v103_v56 = vld [vmem:[%s4111_s1 + $0xf0] sm:$0xff]  ;;  %v648_v58 = vld [vmem:[%s4154_s23] sm:$0xff] }
  0x45   :  { %2116 = vmatmul.msk.f32.gmra.mxu1 %vm133_vm0, %v88_v1  ;;  %v981_v1 = vld [vmem:[%s4112_s5 + $0x68] sm:$0xff] }
  0x49   :  { %590 = vperm.xlu1 %2229, %v462_v55   ;;  %720 = vperm.xlu2 %2230, %v656_v57   ;;  %v665_v55 = vld [vmem:[%s4154_s23 + $0x88] sm:$0xff]  ;;  %v664_v57 = vld [vmem:[%s4154_s23 + $0x80] sm:$0xff] }
  0x4b   :  { %255 = vmatmul.f32.gmra.mxu0 %v83_v61  ;;  %805 = vperm.xlu0 %2228, %v673_v63  }
  0x4d   :  { %2117 = vmatmul.msk.f32.gmra.mxu1 %vm133_vm0, %v90_v6 }
  0x51   :  { %500 = vperm.xlu1 %2229, %v444_v60   ;;  %585 = vperm.xlu2 %2230, %v461_v62   ;;  %v108_v60 = vld [vmem:[%s4111_s1 + $0x118] sm:$0xff] }
  0x53   :  { %258 = vmatmul.f32.gmra.mxu0 %v85_v3  ;;  %715 = vperm.xlu0 %2228, %v655_v5   ;;  %v105_v3 = vld [vmem:[%s4111_s1 + $0x100] sm:$0xff]  ;;  %v982_v5 = vld [vmem:[%s4112_s5 + $0x70] sm:$0xff] }
  0x55   :  { %2118 = vmatmul.msk.f32.gmra.mxu1 %vm133_vm0, %v92_v11 }
  0x59   :  { %800 = vperm.xlu1 %2229, %v672_v2   ;;  %495 = vperm.xlu2 %2230, %v443_v4   ;;  %v980_v4 = vld [vmem:[%s4112_s5 + $0x60] sm:$0xff] }
  0x5b   :  { %261 = vmatmul.f32.gmra.mxu0 %v87_v8  ;;  %580 = vperm.xlu0 %2228, %v460_v10   ;;  %v116_v8 = vld [vmem:[%s4111_s1 + $0x158] sm:$0xff]  ;;  %v978_v10 = vld [vmem:[%s4112_s5 + $0x50] sm:$0xff] }
  0x5c   :  { %2130 = vmatmul.msk.f32.vlgmr.msra.gmra.mxu3 %vm133_vm0, %v116_v8 }
  0x5d   :  { %2119 = vmatmul.msk.f32.gmra.mxu1 %vm133_vm0, %v94_v16  ;;  %v979_v16 = vld [vmem:[%s4112_s5 + $0x58] sm:$0xff] }
  0x61   :  { %710 = vperm.xlu1 %2229, %v654_v7   ;;  %795 = vperm.xlu2 %2230, %v671_v9   ;;  %v110_v7 = vld [vmem:[%s4111_s1 + $0x128] sm:$0xff] }
  0x63   :  { %264 = vmatmul.f32.gmra.mxu0 %v89_v13  ;;  %490 = vperm.xlu0 %2228, %v442_v15   ;;  %v2702_v50 = vpop.permute.xlu2 %750  ;;  %v107_v13 = vld [vmem:[%s4111_s1 + $0x110] sm:$0xff] }
  0x65   :  { %2120 = vmatmul.msk.f32.gmra.mxu1 %vm133_vm0, %v96_v21 }
  0x69   :  { %575 = vperm.xlu1 %2229, %v459_v12   ;;  %705 = vperm.xlu2 %2230, %v653_v14   ;;  %v977_v14 = vld [vmem:[%s4112_s5 + $0x48] sm:$0xff] }
  0x6b   :  { %267 = vmatmul.f32.gmra.mxu0 %v91_v18  ;;  %790 = vperm.xlu0 %2228, %v670_v20   ;;  %v2731_v61 = vpop.permute.xlu2 %530  ;;  %v112_v18 = vld [vmem:[%s4111_s1 + $0x138] sm:$0xff] }
  0x6c   :  { %v975_v20 = vld [vmem:[%s4112_s5 + $0x38] sm:$0xff] }
  0x6d   :  { %2121 = vmatmul.msk.f32.gmra.mxu1 %vm133_vm0, %v98_v26 }
  0x71   :  { %485 = vperm.xlu1 %2229, %v441_v17   ;;  %570 = vperm.xlu2 %2230, %v458_v19   ;;  %v118_v19 = vld [vmem:[%s4111_s1 + $0x168] sm:$0xff] }
  0x72   :  { %2131 = vmatmul.msk.f32.gmra.mxu3 %vm133_vm0, %v118_v19  ;;  %v128_v19 = vld [vmem:[%s4111_s1 + $0x1b8] sm:$0xff] }
  0x73   :  { %270 = vmatmul.f32.gmra.mxu0 %v93_v23  ;;  %700 = vperm.xlu0 %2228, %v652_v25   ;;  %v2762_v9 = vpop.permute.xlu2 %525  ;;  %v109_v23 = vld [vmem:[%s4111_s1 + $0x120] sm:$0xff] }
  0x74   :  { %v976_v25 = vld [vmem:[%s4112_s5 + $0x40] sm:$0xff] }
  0x75   :  { %v2634_v27 = vpop.permute.xlu0 %545  ;;  %2122 = vmatmul.msk.f32.gmra.mxu1 %vm133_vm0, %v100_v32  ;;  %v972_v32 = vld [vmem:[%s4112_s5 + $0x20] sm:$0xff] }
  0x79   :  { %785 = vperm.xlu1 %2229, %v669_v22   ;;  %480 = vperm.xlu2 %2230, %v440_v24   ;;  %v974_v24 = vld [vmem:[%s4112_s5 + $0x30] sm:$0xff] }
  0x7b   :  { %273 = vmatmul.f32.gmra.mxu0 %v95_v29  ;;  %565 = vperm.xlu0 %2228, %v457_v31   ;;  %v2682_v43 = vpop.permute.xlu1 %755  ;;  %v2795_v21 = vpop.permute.xlu2 %825  ;;  %v114_v29 = vld [vmem:[%s4111_s1 + $0x148] sm:$0xff]  ;;  %v120_v31 = vld [vmem:[%s4111_s1 + $0x178] sm:$0xff] }
  0x7c   :  { %4162 = vst [vmem:[#allocation9_spill] sm:$0xff] %v2795_v21  ;;  %2132 = vmatmul.msk.f32.gmra.mxu3 %vm133_vm0, %v120_v31 }
  0x7d   :  { %v2661_v36 = vpop.permute.xlu0 %540  ;;  %2123 = vmatmul.msk.f32.gmra.mxu1 %vm133_vm0, %v102_v38 }
  0x81   :  { %695 = vperm.xlu1 %2229, %v651_v28   ;;  %780 = vperm.xlu2 %2230, %v668_v30  }
  0x83   :  { %276 = vmatmul.f32.gmra.mxu0 %v97_v34  ;;  %475 = vperm.xlu0 %2228, %v439_v37   ;;  %v2709_v53 = vpop.permute.xlu1 %535  ;;  %v111_v34 = vld [vmem:[%s4111_s1 + $0x130] sm:$0xff]  ;;  %v973_v37 = vld [vmem:[%s4112_s5 + $0x28] sm:$0xff]  ;;  %v2836_v38 = vpop.permute.xlu2 %735 }
  0x85   :  { %v2687_v45 = vpop.permute.xlu0 %615  ;;  %2124 = vmatmul.msk.f32.gmra.mxu1 %vm133_vm0, %v104_v44  ;;  %v969_v44 = vld [vmem:[%s4112_s5 + $0x8] sm:$0xff] }
  0x86   :  { %4155 = vst [vmem:[#allocation2_spill] sm:$0xff] %v2687_v45 }
  0x89   :  { %560 = vperm.xlu1 %2229, %v456_v33   ;;  %690 = vperm.xlu2 %2230, %v650_v35   ;;  %v971_v35 = vld [vmem:[%s4112_s5 + $0x18] sm:$0xff] }
  0x8a   :  { %v2704_v51 = vpop.f32.mrf.mxu1 }
  0x8b   :  { %279 = vmatmul.f32.gmra.mxu0 %v99_v40  ;;  %775 = vperm.xlu0 %2228, %v667_v42   ;;  %4156 = vst [vmem:[#allocation3_spill] sm:$0xff] %v2704_v51  ;;  %v2734_v62 = vpop.permute.xlu1 %745  ;;  %v122_v40 = vld [vmem:[%s4111_s1 + $0x188] sm:$0xff] }
  0x8c   :  { %2133 = vmatmul.msk.f32.gmra.mxu3 %vm133_vm0, %v122_v40 }
  0x8d   :  { %v2711_v54 = vpop.permute.xlu0 %610  ;;  %2125 = vmatmul.msk.f32.gmra.mxu1 %vm133_vm0, %v106_v52 }
  0x8e   :  { %4157 = vst [vmem:[#allocation4_spill] sm:$0xff] %v2711_v54 }
  0x91   :  { %470 = vperm.xlu1 %2229, %v438_v39   ;;  %555 = vperm.xlu2 %2230, %v455_v41  }
  0x92   :  { %v2726_v59 = vpop.f32.mrf.mxu1 }
  0x93   :  { %282 = vmatmul.f32.gmra.mxu0 %v101_v47  ;;  %685 = vperm.xlu0 %2228, %v649_v49   ;;  %4158 = vst [vmem:[#allocation5_spill] sm:$0xff] %v2726_v59  ;;  %v2767_v11 = vpop.permute.xlu1 %740  ;;  %v113_v47 = vld [vmem:[%s4111_s1 + $0x140] sm:$0xff]  ;;  %v970_v49 = vld [vmem:[%s4112_s5 + $0x10] sm:$0xff] }
  0x95   :  { %2126 = vmatmul.msk.f32.gmra.mxu1 %vm133_vm0, %v108_v60  ;;  %v2736_v63 = vpop.permute.xlu0 %520 }
  0x99   :  { %770 = vperm.xlu1 %2229, %v666_v46   ;;  %550 = vperm.xlu2 %2230, %v454_v48   ;;  %v968_v48 = vld [vmem:[%s4112_s5] sm:$0xff] }
  0x9a   :  { %v2752_v6 = vpop.f32.mrf.mxu1 }
  0x9b   :  { %285 = vmatmul.f32.gmra.mxu0 %v103_v56  ;;  %680 = vperm.xlu0 %2228, %v648_v58   ;;  %v2808_v26 = vpop.permute.xlu1 %605  ;;  %v2867_v56 = vpop.permute.xlu2 %600 }
  0x9c   :  { %4163 = vst [vmem:[#allocation10_spill] sm:$0xff] %v2808_v26 }
  0x9d   :  { %2127 = vmatmul.msk.f32.gmra.mxu1 %vm133_vm0, %v110_v7  ;;  %v2777_v15 = vpop.permute.xlu0 %820  ;;  %4165 = vst [vmem:[#allocation12_spill] sm:$0xff] %v2867_v56  ;;  %v126_v7 = vld [vmem:[%s4111_s1 + $0x1a8] sm:$0xff] }
  0x9e   :  { %4161 = vst [vmem:[#allocation8_spill] sm:$0xff] %v2777_v15 }
  0xa0   :  { %v2741_v2 = vpop.f32.mrf.mxu0 }
  0xa1   :  { %765 = vperm.xlu1 %2229, %v665_v55   ;;  %760 = vperm.xlu2 %2230, %v664_v57   ;;  %4159 = vst [vmem:[#allocation6_spill] sm:$0xff] %v2741_v2  ;;  %v124_v55 = vld [vmem:[%s4111_s1 + $0x198] sm:$0xff] }
  0xa2   :  { %v2782_v17 = vpop.f32.mrf.mxu1  ;;  %2134 = vmatmul.msk.f32.gmra.mxu3 %vm133_vm0, %v124_v55  ;;  %v123_v55 = vld [vmem:[%s4111_s1 + $0x190] sm:$0xff] }
  0xa3   :  { %288 = vmatmul.f32.gmra.mxu0 %v105_v3  ;;  %1074 = vperm.xlu0 %2228, %v982_v5   ;;  %v2843_v41 = vpop.permute.xlu1 %515  ;;  %v983_v3 = vld [vmem:[%s4113_s6] sm:$0xff]  ;;  %v2891_v8 = vpop.permute.xlu2 %510 }
  0xa5   :  { %2128 = vmatmul.msk.f32.gmra.mxu1 %vm133_vm0, %v112_v18  ;;  %v2815_v30 = vpop.permute.xlu0 %730 }
  0xa8   :  { %v2769_v12 = vpop.f32.mrf.mxu0 }
  0xa9   :  { %1069 = vperm.xlu1 %2229, %v981_v1   ;;  %1064 = vperm.xlu2 %2230, %v980_v4   ;;  %4160 = vst [vmem:[#allocation7_spill] sm:$0xff] %v2769_v12  ;;  %v115_v1 = vld [vmem:[%s4111_s1 + $0x150] sm:$0xff]  ;;  %v984_v4 = vld [vmem:[%s4113_s6 + $0x8] sm:$0xf] }
  0xaa   :  { %v2810_v28 = vpop.f32.mrf.mxu1  ;;  %2135 = vmatmul.msk.f32.gmra.mxu3 %vm133_vm0, %v126_v7 }
  0xab   :  { %291 = vmatmul.f32.gmra.mxu0 %v107_v13  ;;  %1059 = vperm.xlu0 %2228, %v979_v16   ;;  %v2870_v57 = vpop.permute.xlu1 %815 }
  0xac   :  { %4166 = vst [vmem:[#allocation13_spill] sm:$0xff] %v2870_v57 }
  0xad   :  { %2129 = vmatmul.msk.f32.gmra.mxu1 %vm133_vm0, %v114_v29  ;;  %v2845_v42 = vpop.permute.xlu0 %595 }
  0xae   :  { %4164 = vst [vmem:[#allocation11_spill] sm:$0xff] %v2845_v42 }
  0xb0   :  { %v2797_v22 = vpop.f32.mrf.mxu0 }
  0xb1   :  { %1054 = vperm.xlu1 %2229, %v978_v10   ;;  %1049 = vperm.xlu2 %2230, %v977_v14   ;;  %v117_v14 = vld [vmem:[%s4111_s1 + $0x160] sm:$0xff] }
  0xb2   :  { %v2838_v39 = vpop.f32.mrf.mxu1  ;;  %2136 = vmatmul.msk.f32.gmra.mxu3 %vm133_vm0, %v128_v19  ;;  %v125_v19 = vld [vmem:[%s4111_s1 + $0x1a0] sm:$0xff] }
  0xb3   :  { %294 = vmatmul.f32.gmra.mxu0 %v109_v23  ;;  %1044 = vperm.xlu0 %2228, %v976_v25   ;;  %v2893_v10 = vpop.permute.xlu1 %725 }
  0xb5   :  { %v2872_v58 = vpop.permute.xlu0 %505 }
  0xb8   :  { %v2825_v33 = vpop.f32.mrf.mxu0 }
  0xb9   :  { %1039 = vperm.xlu1 %2229, %v975_v20   ;;  %1034 = vperm.xlu2 %2230, %v974_v24   ;;  %v2908_v20 = vpop.permute.xlu2 %810  ;;  %v119_v24 = vld [vmem:[%s4111_s1 + $0x170] sm:$0xff] }
  0xba   :  { %v2862_v52 = vpop.f32.mrf.mxu1  ;;  %4168 = vst [vmem:[#allocation15_spill] sm:$0xff] %v2908_v20 }
  0xbb   :  { %297 = vmatmul.f32.gmra.mxu0 %v111_v34  ;;  %1029 = vperm.xlu0 %2228, %v973_v37   ;;  %v2915_v25 = vpop.permute.xlu1 %590 }
  0xbc   :  { %4169 = vst [vmem:[#allocation16_spill] sm:$0xff] %v2915_v25 }
  0xbd   :  { %v2900_v16 = vpop.permute.xlu0 %805 }
  0xbe   :  { %4167 = vst [vmem:[#allocation14_spill] sm:$0xff] %v2900_v16 }
  0xc0   :  { %v2851_v46 = vpop.f32.mrf.mxu0 }
  0xc1   :  { %1024 = vperm.xlu1 %2229, %v972_v32   ;;  %1019 = vperm.xlu2 %2230, %v971_v35   ;;  %v130_v32 = vld [vmem:[%s4111_s1 + $0x1c8] sm:$0xff]  ;;  %v121_v35 = vld [vmem:[%s4111_s1 + $0x180] sm:$0xff]  ;;  %v2930_v37 = vpop.permute.xlu2 %720 }
  0xc2   :  { %v2885_v5 = vpop.f32.mrf.mxu1  ;;  %2137 = vmatmul.msk.f32.gmra.mxu3 %vm133_vm0, %v130_v32 }
  0xc3   :  { %300 = vmatmul.f32.gmra.mxu0 %v113_v47  ;;  %1014 = vperm.xlu0 %2228, %v970_v49   ;;  %v2935_v47 = vpop.permute.xlu1 %500 }
  0xc5   :  { %v2919_v31 = vpop.permute.xlu0 %715 }
  0xc8   :  { %v2874_v60 = vpop.f32.mrf.mxu0 }
  0xc9   :  { %1009 = vperm.xlu1 %2229, %v969_v44   ;;  %1004 = vperm.xlu2 %2230, %v968_v48   ;;  %v132_v44 = vld [vmem:[%s4111_s1 + $0x1d8] sm:$0xff] }
  0xca   :  { %v2902_v18 = vpop.f32.mrf.mxu1  ;;  %2138 = vmatmul.msk.f32.gmra.mxu3 %vm133_vm0, %v132_v44 }
  0xcb   :  { %303 = vmatmul.f32.gmra.mxu0 %v115_v1  ;;  %1307 = vperm.xlu0 %2228, %v984_v4   ;;  %v2945_v4 = vpop.permute.xlu1 %800 }
  0xcc   :  { %4172 = vst [vmem:[#allocation19_spill] sm:$0xff] %v2945_v4 }
  0xcd   :  { %v2937_v48 = vpop.permute.xlu0 %580 }
  0xce   :  { %4170 = vst [vmem:[#allocation17_spill] sm:$0xff] %v2937_v48 }
  0xd0   :  { %v2895_v13 = vpop.f32.mrf.mxu0 }
  0xd1   :  { %1302 = vperm.xlu2 %2230, %v983_v3   ;;  %v2943_v3 = vpop.permute.xlu2 %585 }
  0xd2   :  { %v2917_v29 = vpop.f32.mrf.mxu1  ;;  %4171 = vst [vmem:[#allocation18_spill] sm:$0xff] %v2943_v3 }
  0xd3   :  { %306 = vmatmul.f32.gmra.mxu0 %v117_v14 }
  0xd5   :  { %v2947_v7 = vpop.permute.xlu0 %490 }
  0xd8   :  { %v2910_v23 = vpop.f32.mrf.mxu0 }
  0xd9   :  { %v2952_v32 = vpop.permute.xlu2 %495 }
  0xda   :  { %v378_v40 = vpop.f32.mrf.mxu1 }
  0xdb   :  { %309 = vmatmul.f32.gmra.mxu0 %v119_v24 }
  0xdd   :  { %v2959_v0 = vpop.permute.xlu0 %790 }
  0xde   :  { %4173 = vst [vmem:[#allocation20_spill] sm:$0xff] %v2959_v0  ;;  %v131_v0 = vld [vmem:[%s4111_s1 + $0x1d0] sm:$0xff] }
  0xe0   :  { %v2925_v34 = vpop.f32.mrf.mxu0 }
  0xe1   :  { %v2961_v48 = vpop.permute.xlu2 %795 }
  0xe2   :  { %v381_v1 = vpop.f32.mrf.mxu1  ;;  %4174 = vst [vmem:[#allocation21_spill] sm:$0xff] %v2961_v48 }
  0xe3   :  { %312 = vmatmul.f32.gmra.mxu0 %v121_v35  ;;  %v2954_v35 = vpop.permute.xlu1 %710 }
  0xe5   :  { %v2968_v20 = vpop.permute.xlu0 %700 }
  0xe6   :  { %4176 = vst [vmem:[#allocation23_spill] sm:$0xff] %v2968_v20 }
  0xe8   :  { %v268_v49 = vpop.f32.mrf.mxu0 }
  0xe9   :  { %v2973_v42 = vpop.permute.xlu2 %705 }
  0xea   :  { %v384_v24 = vpop.f32.mrf.mxu1 }
  0xeb   :  { %315 = vmatmul.f32.gmra.mxu0 %v123_v55  ;;  %v127_v55 = vld [vmem:[%s4111_s1 + $0x1b0] sm:$0xff]  ;;  %v2966_v3 = vpop.permute.xlu1 %575 }
  0xec   :  { %4175 = vst [vmem:[#allocation22_spill] sm:$0xff] %v2966_v3 }
  0xed   :  { %v2977_v48 = vpop.permute.xlu0 %565 }
  0xee   :  { %4178 = vst [vmem:[#allocation25_spill] sm:$0xff] %v2977_v48 }
  0xf0   :  { %v271_v14 = vpop.f32.mrf.mxu0 }
  0xf1   :  { %v2979_v56 = vpop.permute.xlu2 %570 }
  0xf2   :  { %v387_v4 = vpop.f32.mrf.mxu1 }
  0xf3   :  { %318 = vmatmul.f32.gmra.mxu0 %v125_v19  ;;  %v129_v19 = vld [vmem:[%s4111_s1 + $0x1c0] sm:$0xff] }
  0xf8   :  { %v274_v44 = vpop.f32.mrf.mxu0 }
  0xf9   :  { %v382_v12 = vadd.f32 %v381_v1, %v274_v44 }
  0xfa   :  { %v390_v25 = vpop.f32.mrf.mxu1 }
  0xfb   :  { %321 = vmatmul.f32.gmra.mxu0 %v127_v55  ;;  %v2975_v55 = vpop.permute.xlu1 %485 }
  0xfc   :  { %4177 = vst [vmem:[#allocation24_spill] sm:$0xff] %v2975_v55  ;;  %v379_v55 = vadd.f32 %v378_v40, %v271_v14 }
 0x100   :  { %v277_v16 = vpop.f32.mrf.mxu0 }
 0x101   :  { %v385_v2 = vadd.f32 %v384_v24, %v277_v16  ;;  %v629_v16 = vmul.f32 %v2762_v9, %v382_v12 }
 0x102   :  { %v393_v15 = vpop.f32.mrf.mxu1 }
 0x103   :  { %324 = vmatmul.f32.gmra.mxu0 %v129_v19  ;;  %v2981_v45 = vpop.permute.xlu1 %785  ;;  %v2983_v19 = vpop.permute.xlu0 %475  ;;  %v839_v12 = vadd.f32 %v2836_v38, %v629_v16  ;;  %v4180_v14 = vld [vmem:[#allocation24_spill] sm:$0xff] }
 0x104   :  { %4179 = vst [vmem:[#allocation26_spill] sm:$0xff] %v2981_v45 }
 0x108   :  { %v280_v57 = vpop.f32.mrf.mxu0 }
 0x109   :  { %v388_v26 = vadd.f32 %v387_v4, %v280_v57  ;;  %v481_v57 = vpop.permute.xlu2 %480  ;;  %v376_v4 = vadd.f32 %v2917_v29, %v268_v49 }
 0x10a   :  { %v2985_v51 = vpop.f32.mrf.mxu1 }
 0x10b   :  { %327 = vmatmul.f32.gmra.mxu0 %v131_v0  ;;  %v631_v48 = vmul.f32 %v2709_v53, %v388_v26  ;;  %v628_v53 = vmul.f32 %v2736_v63, %v379_v55  ;;  %v367_v63 = vadd.f32 %v2862_v52, %v2895_v13  ;;  %v4182_v55 = vld [vmem:[#allocation7_spill] sm:$0xff] }
 0x10d   :  { %v624_v52 = vmul.f32 %v2935_v47, %v367_v63 }
 0x10f   :  { %v834_v47 = vadd.f32 %v2954_v35, %v624_v52  ;;  %v940_v52 = vld [vmem:[%s4114_s4 + $0x10] sm:$0xff] }
 0x110   :  { %v283_v21 = vpop.f32.mrf.mxu0 }
 0x111   :  { %v391_v3 = vadd.f32 %v390_v25, %v283_v21  ;;  %v630_v21 = vmul.f32 %v2731_v61, %v385_v2  ;;  %v370_v2 = vadd.f32 %v2885_v5, %v2910_v23  ;;  %v3018_v23 = vpop.permute.xlu2 %780  ;;  %v864_v35 = vmax.f32 %v834_v47, 0.0 }
 0x112   :  { %v3004_v61 = vpop.f32.mrf.mxu1 }
 0x113   :  { %v632_v0 = vmul.f32 %v2661_v36, %v391_v3  ;;  %v841_v36 = vadd.f32 %v2734_v62, %v631_v48  ;;  %v627_v62 = vmul.f32 %v2843_v41, %v376_v4  ;;  %v625_v5 = vmul.f32 %v2872_v58, %v370_v2 }
 0x114   :  { %v869_v41 = vmax.f32 %v839_v12, 0.0  ;;  %v358_v48 = vadd.f32 %v2782_v17, %v2825_v33 }
 0x115   :  { %v842_v45 = vadd.f32 %v2702_v50, %v632_v0  ;;  %v840_v50 = vadd.f32 %v2767_v11, %v630_v21  ;;  %v871_v9 = vmax.f32 %v841_v36, 0.0  ;;  %v838_v11 = vadd.f32 %v2815_v30, %v628_v53  ;;  %v4183_v0 = vld [vmem:[#allocation5_spill] sm:$0xff] }
 0x116   :  { %v352_v17 = vadd.f32 %v4183_v0, %v4182_v55 }
 0x118   :  { %v286_v54 = vpop.f32.mrf.mxu0 }
 0x119   :  { %v394_v59 = vadd.f32 %v393_v15, %v286_v54  ;;  %v696_v54 = vpop.permute.xlu1 %695  ;;  %v691_v33 = vpop.permute.xlu2 %690 }
 0x11b   :  { %v633_v20 = vmul.f32 %v2634_v27, %v394_v59  ;;  %v373_v27 = vadd.f32 %v2902_v18, %v2925_v34  ;;  %v3001_v59 = vpop.permute.xlu0 %775  ;;  %v364_v18 = vadd.f32 %v2838_v39, %v2874_v60  ;;  %v835_v60 = vadd.f32 %v2919_v31, %v625_v5  ;;  %v402_v34 = vpop.f32.mrf.mxu1 }
 0x11c   :  { %v355_v31 = vadd.f32 %v2752_v6, %v2797_v22  ;;  %v4184_v6 = vld [vmem:[#allocation6_spill] sm:$0xff]  ;;  %v4185_v22 = vld [vmem:[#allocation3_spill] sm:$0xff] }
 0x11d   :  { %v843_v25 = vadd.f32 %v2682_v43, %v633_v20  ;;  %v872_v43 = vmax.f32 %v842_v45, 0.0  ;;  %v626_v26 = vmul.f32 %v2891_v8, %v373_v27  ;;  %v870_v45 = vmax.f32 %v840_v50, 0.0  ;;  %v3044_v50 = vpop.f32.mrf.mxu3 }
 0x11e   :  { %v837_v20 = vadd.f32 %v2893_v10, %v627_v62  ;;  %v868_v8 = vmax.f32 %v838_v11, 0.0  ;;  %v623_v29 = vmul.f32 %v2952_v32, %v364_v18  ;;  %v361_v10 = vadd.f32 %v2810_v28, %v2851_v46  ;;  %v4181_v28 = vld [vmem:[#allocation23_spill] sm:$0xff] }
 0x11f   :  { %v873_v24 = vmax.f32 %v843_v25, 0.0  ;;  %v836_v13 = vadd.f32 %v2930_v37, %v626_v26  ;;  %v865_v49 = vmax.f32 %v835_v60, 0.0  ;;  %v621_v32 = vmul.f32 %v4180_v14, %v358_v48  ;;  %v946_v60 = vld [vmem:[%s4114_s4 + $0x40] sm:$0xff] }
 0x120   :  { %v2996_v15 = vpop.f32.mrf.mxu0  ;;  %v867_v58 = vmax.f32 %v837_v20, 0.0  ;;  %v622_v37 = vmul.f32 %v2947_v7, %v361_v10  ;;  %v833_v1 = vadd.f32 %v2973_v42, %v623_v29  ;;  %v620_v7 = vmul.f32 %v481_v57, %v355_v31  ;;  %v952_v31 = vld [vmem:[%s4114_s4 + $0x70] sm:$0xff] }
 0x121   :  { %1123 = vmatpush.msra.mxu2 %v873_v24  ;;  %v561_v30 = vpop.permute.xlu1 %560  ;;  %v866_v40 = vmax.f32 %v836_v13, 0.0  ;;  %v831_v21 = vadd.f32 %v696_v54, %v621_v32  ;;  %v349_v16 = vadd.f32 %v4185_v22, %v4184_v6  ;;  %v619_v27 = vmul.f32 %v2983_v19, %v352_v17  ;;  %v938_v19 = vld [vmem:[%s4114_s4] sm:$0xff] }
 0x122   :  { %v832_v46 = vadd.f32 %v4181_v28, %v622_v37  ;;  %v863_v42 = vmax.f32 %v833_v1, 0.0  ;;  %v830_v24 = vadd.f32 %v691_v33, %v620_v7  ;;  %v950_v37 = vld [vmem:[%s4114_s4 + $0x60] sm:$0xff]  ;;  %v4187_v33 = vld [vmem:[#allocation4_spill] sm:$0xff] }
 0x123   :  { %1124 = vmatpush.msra.mxu2 %v872_v43  ;;  %v686_v39 = vpop.permute.xlu0 %685  ;;  %v405_v43 = vpop.f32.mrf.mxu1  ;;  %v861_v2 = vmax.f32 %v831_v21, 0.0  ;;  %v954_v32 = vld [vmem:[%s4114_s4 + $0x80] sm:$0xff] }
 0x124   :  { %v862_v36 = vmax.f32 %v832_v46, 0.0  ;;  %v829_v54 = vadd.f32 %v686_v39, %v619_v27  ;;  %v944_v39 = vld [vmem:[%s4114_s4 + $0x30] sm:$0xff]  ;;  %v4189_v22 = vld [vmem:[#allocation2_spill] sm:$0xff] }
 0x125   :  { %1125 = vmatpush.msra.mxu2 %v871_v9  ;;  %v860_v9 = vmax.f32 %v830_v24, 0.0  ;;  %v414_v20 = vpop.f32.mrf.mxu3 }
 0x126   :  { %v859_v26 = vmax.f32 %v829_v54, 0.0 }
 0x127   :  { %1126 = vmatpush.msra.mxu2 %v870_v45  ;;  %v4186_v45 = vld [vmem:[#allocation25_spill] sm:$0xff] }
 0x128   :  { %v3020_v38 = vpop.f32.mrf.mxu0 }
 0x129   :  { %1127 = vmatpush.msra.mxu2 %v869_v41  ;;  %v471_v4 = vpop.permute.xlu1 %470 }
 0x12a   :  { %v618_v57 = vmul.f32 %v471_v4, %v349_v16  ;;  %v4188_v4 = vld [vmem:[#allocation10_spill] sm:$0xff] }
 0x12b   :  { %1128 = vmatpush.msra.mxu2 %v868_v8  ;;  %v681_v53 = vpop.permute.xlu0 %680 }
 0x12c   :  { %v828_v12 = vadd.f32 %v681_v53, %v618_v57  ;;  %v958_v53 = vld [vmem:[%s4114_s4 + $0xa0] sm:$0xff]  ;;  %v4192_v57 = vld [vmem:[#allocation8_spill] sm:$0xff] }
 0x12d   :  { %1129 = vmatpush.msra.mxu2 %v867_v58  ;;  %v417_v13 = vpop.f32.mrf.mxu3 }
 0x12e   :  { %v858_v18 = vmax.f32 %v828_v12, 0.0 }
 0x12f   :  { %1130 = vmatpush.msra.mxu2 %v866_v40  ;;  %v948_v40 = vld [vmem:[%s4114_s4 + $0x50] sm:$0xff] }
 0x130   :  { %v295_v3 = vpop.f32.mrf.mxu0 }
 0x131   :  { %v403_v44 = vadd.f32 %v402_v34, %v295_v3  ;;  %1131 = vmatpush.msra.mxu2 %v865_v49 }
 0x133   :  { %v3039_v25 = vmul.f32 %v561_v30, %v403_v44  ;;  %1132 = vmatpush.msra.mxu2 %v864_v35  ;;  %v942_v30 = vld [vmem:[%s4114_s4 + $0x20] sm:$0xff]  ;;  %v956_v44 = vld [vmem:[%s4114_s4 + $0x90] sm:$0xff] }
 0x135   :  { %1133 = vmatpush.msra.mxu2 %v863_v42 }
 0x137   :  { %1134 = vmatpush.msra.mxu2 %v862_v36  ;;  %v4190_v36 = vld [vmem:[#allocation12_spill] sm:$0xff] }
 0x138   :  { %v298_v62 = vpop.f32.mrf.mxu0 }
 0x139   :  { %v406_v63 = vadd.f32 %v405_v43, %v298_v62  ;;  %1135 = vmatpush.msra.mxu2 %v861_v2  ;;  %v4191_v43 = vld [vmem:[#allocation9_spill] sm:$0xff] }
 0x13b   :  { %v637_v11 = vmul.f32 %v4186_v45, %v406_v63  ;;  %1136 = vmatpush.msra.mxu2 %v860_v9  ;;  %v4193_v9 = vld [vmem:[#allocation11_spill] sm:$0xff] }
 0x13d   :  { %1137 = vmatpush.msra.mxu2 %v859_v26  ;;  %v3051_v5 = vadd.f32 %v3001_v59, %v637_v11  ;;  %v420_v59 = vpop.f32.mrf.mxu3  ;;  %v4194_v26 = vld [vmem:[#allocation13_spill] sm:$0xff]  ;;  %v556_v11 = vpop.permute.xlu2 %555 }
 0x13f   :  { %1138 = vmatpush.msra.mxu2 %v858_v18 }
 0x140   :  { %v3053_v41 = vpop.f32.mrf.mxu0  ;;  %1139 = vmatmul.f32.vlgmr.msra.gmra.mxu2 %v938_v19  ;;  %v4195_v19 = vld [vmem:[#allocation16_spill] sm:$0xff] }
 0x145   :  { %v423_v34 = vpop.f32.mrf.mxu3 }
 0x148   :  { %v304_v8 = vpop.f32.mrf.mxu0  ;;  %1142 = vmatmul.f32.gmra.mxu2 %v940_v52 }
 0x14d   :  { %v426_v48 = vpop.f32.mrf.mxu3 }
 0x150   :  { %v307_v29 = vpop.f32.mrf.mxu0  ;;  %1145 = vmatmul.f32.gmra.mxu2 %v942_v30 }
 0x151   :  { %v415_v18 = vadd.f32 %v414_v20, %v307_v29  ;;  %v960_v29 = vld [vmem:[%s4114_s4 + $0xb0] sm:$0xff] }
 0x155   :  { %v429_v1 = vpop.f32.mrf.mxu3 }
 0x158   :  { %v310_v58 = vpop.f32.mrf.mxu0  ;;  %1148 = vmatmul.f32.gmra.mxu2 %v944_v39 }
 0x159   :  { %v418_v62 = vadd.f32 %v417_v13, %v310_v58  ;;  %v4198_v58 = vld [vmem:[#allocation14_spill] sm:$0xff] }
 0x15d   :  { %v432_v14 = vpop.f32.mrf.mxu3 }
 0x160   :  { %v313_v10 = vpop.f32.mrf.mxu0  ;;  %1151 = vmatmul.f32.gmra.mxu2 %v946_v60  ;;  %v408_v60 = vpop.f32.mrf.mxu1 }
 0x161   :  { %v421_v24 = vadd.f32 %v420_v59, %v313_v10  ;;  %v4196_v59 = vld [vmem:[#allocation15_spill] sm:$0xff]  ;;  %v4197_v10 = vld [vmem:[#allocation18_spill] sm:$0xff] }
 0x163   :  { %v642_v52 = vmul.f32 %v4195_v19, %v421_v24  ;;  %v961_v19 = vld [vmem:[%s4114_s4 + $0xb8] sm:$0xff] }
 0x165   :  { %v435_v35 = vpop.f32.mrf.mxu3 }
 0x168   :  { %v316_v47 = vpop.f32.mrf.mxu0  ;;  %1154 = vmatmul.f32.gmra.mxu2 %v948_v40  ;;  %v641_v40 = vmul.f32 %v4197_v10, %v418_v62  ;;  %v945_v62 = vld [vmem:[%s4114_s4 + $0x38] sm:$0xff] }
 0x169   :  { %v424_v42 = vadd.f32 %v423_v34, %v316_v47  ;;  %v412_v34 = vadd.f32 %v3044_v50, %v304_v8 }
 0x16b   :  { %v643_v12 = vmul.f32 %v4193_v9, %v424_v42  ;;  %v947_v9 = vld [vmem:[%s4114_s4 + $0x48] sm:$0xff] }
 0x16d   :  { %v853_v47 = vadd.f32 %v4198_v58, %v643_v12  ;;  %v949_v12 = vld [vmem:[%s4114_s4 + $0x58] sm:$0xff] }
 0x16f   :  { %v883_v8 = vmax.f32 %v853_v47, 0.0 }
 0x170   :  { %v319_v49 = vpop.f32.mrf.mxu0  ;;  %1157 = vmatmul.f32.gmra.mxu2 %v950_v37  ;;  %v4199_v37 = vld [vmem:[#allocation17_spill] sm:$0xff] }
 0x171   :  { %v427_v17 = vadd.f32 %v426_v48, %v319_v49  ;;  %v409_v48 = vadd.f32 %v408_v60, %v3053_v41  ;;  %v640_v49 = vmul.f32 %v4199_v37, %v415_v18  ;;  %v959_v18 = vld [vmem:[%s4114_s4 + $0xa8] sm:$0xff] }
 0x172   :  { %v967_v60 = vld [vmem:[%s4114_s4 + $0xe8] sm:$0xff] }
 0x173   :  { %v644_v27 = vmul.f32 %v4190_v36, %v427_v17  ;;  %v638_v41 = vmul.f32 %v2979_v56, %v409_v48  ;;  %v962_v56 = vld [vmem:[%s4114_s4 + $0xc0] sm:$0xff] }
 0x175   :  { %v854_v39 = vadd.f32 %v4196_v59, %v644_v27  ;;  %v965_v59 = vld [vmem:[%s4114_s4 + $0xd8] sm:$0xff] }
 0x177   :  { %v884_v20 = vmax.f32 %v854_v39, 0.0 }
 0x178   :  { %v322_v3 = vpop.f32.mrf.mxu0  ;;  %1160 = vmatmul.f32.gmra.mxu2 %v952_v31 }
 0x179   :  { %v430_v55 = vadd.f32 %v429_v1, %v322_v3  ;;  %v4200_v1 = vld [vmem:[#allocation19_spill] sm:$0xff]  ;;  %v4201_v3 = vld [vmem:[#allocation22_spill] sm:$0xff] }
 0x17a   :  { %v852_v31 = vadd.f32 %v4200_v1, %v642_v52  ;;  %v639_v50 = vmul.f32 %v4201_v3, %v412_v34  ;;  %v963_v52 = vld [vmem:[%s4114_s4 + $0xc8] sm:$0xff] }
 0x17b   :  { %v645_v6 = vmul.f32 %v4188_v4, %v430_v55  ;;  %v551_v55 = vpop.permute.xlu2 %550  ;;  %v848_v4 = vadd.f32 %v3018_v23, %v638_v41  ;;  %v964_v23 = vld [vmem:[%s4114_s4 + $0xd0] sm:$0xff] }
 0x17d   :  { %v855_v45 = vadd.f32 %v4194_v26, %v645_v6  ;;  %v953_v26 = vld [vmem:[%s4114_s4 + $0x78] sm:$0xff] }
 0x17f   :  { %v885_v13 = vmax.f32 %v855_v45, 0.0  ;;  %v955_v45 = vld [vmem:[%s4114_s4 + $0x88] sm:$0xff] }
 0x180   :  { %v325_v28 = vpop.f32.mrf.mxu0  ;;  %1163 = vmatmul.f32.gmra.mxu2 %v954_v32 }
 0x181   :  { %v433_v46 = vadd.f32 %v432_v14, %v325_v28  ;;  %v4202_v14 = vld [vmem:[#allocation21_spill] sm:$0xff]  ;;  %v771_v28 = vpop.permute.xlu1 %770 }
 0x182   :  { %v851_v32 = vadd.f32 %v4202_v14, %v641_v40 }
 0x183   :  { %v646_v7 = vmul.f32 %v4187_v33, %v433_v46  ;;  %v882_v46 = vmax.f32 %v852_v31, 0.0  ;;  %v4204_v33 = vld [vmem:[#allocation26_spill] sm:$0xff]  ;;  %v761_v36 = vpop.permute.xlu2 %760 }
 0x184   :  { %v881_v17 = vmax.f32 %v851_v32, 0.0 }
 0x185   :  { %v856_v54 = vadd.f32 %v4192_v57, %v646_v7  ;;  %v849_v7 = vadd.f32 %v4204_v33, %v639_v50  ;;  %v941_v57 = vld [vmem:[%s4114_s4 + $0x18] sm:$0xff] }
 0x187   :  { %v886_v30 = vmax.f32 %v856_v54, 0.0  ;;  %v943_v54 = vld [vmem:[%s4114_s4 + $0x28] sm:$0xff] }
 0x188   :  { %v328_v0 = vpop.f32.mrf.mxu0  ;;  %1166 = vmatmul.f32.gmra.mxu2 %v956_v44  ;;  %v4203_v44 = vld [vmem:[#allocation20_spill] sm:$0xff] }
 0x189   :  { %v436_v21 = vadd.f32 %v435_v35, %v328_v0  ;;  %v850_v35 = vadd.f32 %v4203_v44, %v640_v49  ;;  %v400_v0 = vadd.f32 %v3004_v61, %v3020_v38  ;;  %v878_v38 = vmax.f32 %v848_v4, 0.0  ;;  %v766_v24 = vpop.permute.xlu1 %765 }
 0x18b   :  { %v647_v16 = vmul.f32 %v4189_v22, %v436_v21  ;;  %v397_v21 = vadd.f32 %v2985_v51, %v2996_v15  ;;  %v880_v42 = vmax.f32 %v850_v35, 0.0  ;;  %v635_v6 = vmul.f32 %v556_v11, %v400_v0  ;;  %v957_v11 = vld [vmem:[%s4114_s4 + $0x98] sm:$0xff]  ;;  %v1065_v33 = vpop.permute.xlu2 %1064 }
 0x18c   :  { %v879_v22 = vmax.f32 %v849_v7, 0.0  ;;  %v877_v51 = vmax.f32 %v3051_v5, 0.0  ;;  %v966_v5 = vld [vmem:[%s4114_s4 + $0xe0] sm:$0xff] }
 0x18d   :  { %v857_v2 = vadd.f32 %v4191_v43, %v647_v16  ;;  %v634_v61 = vmul.f32 %v551_v55, %v397_v21  ;;  %v846_v16 = vadd.f32 %v771_v28, %v3039_v25  ;;  %v845_v15 = vadd.f32 %v766_v24, %v635_v6  ;;  %v939_v25 = vld [vmem:[%s4114_s4 + $0x8] sm:$0xff]  ;;  %v1075_v55 = vpop.permute.xlu0 %1074 }
 0x18f   :  { %v887_v63 = vmax.f32 %v857_v2, 0.0  ;;  %v876_v27 = vmax.f32 %v846_v16, 0.0  ;;  %v875_v43 = vmax.f32 %v845_v15, 0.0 }
 0x190   :  { %1169 = vmatmul.f32.gmra.mxu2 %v958_v53  ;;  %v844_v53 = vadd.f32 %v761_v36, %v634_v61 }
 0x191   :  { %1187 = vmatpush.msrb.mxu3 %v887_v63  ;;  %v951_v63 = vld [vmem:[%s4114_s4 + $0x68] sm:$0xff]  ;;  %v1070_v0 = vpop.permute.xlu1 %1069 }
 0x192   :  { %v874_v2 = vmax.f32 %v844_v53, 0.0 }
 0x193   :  { %1188 = vmatpush.msrb.mxu3 %v886_v30  ;;  %v1050_v4 = vpop.permute.xlu2 %1049 }
 0x195   :  { %1189 = vmatpush.msrb.mxu3 %v885_v13  ;;  %v1060_v21 = vpop.permute.xlu0 %1059 }
 0x197   :  { %1190 = vmatpush.msrb.mxu3 %v884_v20 }
 0x198   :  { %1172 = vmatmul.f32.gmra.mxu2 %v960_v29 }
 0x199   :  { %1191 = vmatpush.msrb.mxu3 %v883_v8 }
 0x19b   :  { %1192 = vmatpush.msrb.mxu3 %v882_v46  ;;  %v1035_v53 = vpop.permute.xlu2 %1034 }
 0x19d   :  { %1193 = vmatpush.msrb.mxu3 %v881_v17  ;;  %v1045_v24 = vpop.permute.xlu0 %1044 }
 0x19f   :  { %1194 = vmatpush.msrb.mxu3 %v880_v42 }
 0x1a0   :  { %1175 = vmatmul.f32.gmra.mxu2 %v962_v56  ;;  %v1055_v56 = vpop.permute.xlu1 %1054 }
 0x1a1   :  { %1195 = vmatpush.msrb.mxu3 %v879_v22 }
 0x1a3   :  { %1196 = vmatpush.msrb.mxu3 %v878_v38 }
 0x1a5   :  { %1197 = vmatpush.msrb.mxu3 %v877_v51 }
 0x1a7   :  { %1198 = vmatpush.msrb.mxu3 %v876_v27 }
 0x1a8   :  { %1178 = vmatmul.f32.gmra.mxu2 %v964_v23  ;;  %v1040_v36 = vpop.permute.xlu1 %1039 }
 0x1a9   :  { %1199 = vmatpush.msrb.mxu3 %v875_v43 }
 0x1ab   :  { %1200 = vmatpush.msrb.mxu3 %v874_v2 }
 0x1ac   :  { %2139 = vmatmul.msk.f32.vlgmr.msrb.gmra.mxu3 %vm1077_vm1, %v939_v25  ;;  %v3227_v25 = vld [vmem:[%s4115_s15 + $0x78] sm:$0xff] }
 0x1ad   :  { %1277 = vmatpush.msrb.mxu2 %v3227_v25 }
 0x1b0   :  { %1181 = vmatmul.f32.gmra.mxu2 %v966_v5  ;;  %v3232_v5 = vld [vmem:[%s4115_s15 + $0x70] sm:$0xff] }
 0x1b1   :  { %1278 = vmatpush.msrb.mxu2 %v3232_v5 }
 0x1b4   :  { %2140 = vmatmul.msk.f32.gmra.mxu3 %vm1077_vm1, %v941_v57 }
 0x1bc   :  { %2141 = vmatmul.msk.f32.gmra.mxu3 %vm1077_vm1, %v943_v54 }
 0x1c3   :  { %v3177_v30 = vpop.f32.mrf.mxu2 }
 0x1c4   :  { %2142 = vmatmul.msk.f32.gmra.mxu3 %vm1077_vm1, %v945_v62  ;;  %v3241_v62 = vld [vmem:[%s4115_s15 + $0x68] sm:$0xff] }
 0x1c5   :  { %1279 = vmatpush.msrb.mxu2 %v3241_v62 }
 0x1cb   :  { %v3183_v39 = vpop.f32.mrf.mxu2 }
 0x1cc   :  { %2143 = vmatmul.msk.f32.gmra.mxu3 %vm1077_vm1, %v947_v9  ;;  %v3246_v9 = vld [vmem:[%s4115_s15 + $0xf8] sm:$0xff] }
 0x1cd   :  { %1314 = vmatpush.msra.mxu3 %v3246_v9 }
 0x1d3   :  { %v3189_v34 = vpop.f32.mrf.mxu2 }
 0x1d4   :  { %2144 = vmatmul.msk.f32.gmra.mxu3 %vm1077_vm1, %v949_v12 }
 0x1db   :  { %v3191_v10 = vpop.f32.mrf.mxu2 }
 0x1dc   :  { %2145 = vmatmul.msk.f32.gmra.mxu3 %vm1077_vm1, %v951_v63 }
 0x1e3   :  { %v3195_v13 = vpop.f32.mrf.mxu2 }
 0x1e4   :  { %2146 = vmatmul.msk.f32.gmra.mxu3 %vm1077_vm1, %v953_v26  ;;  %v3255_v26 = vld [vmem:[%s4115_s15 + $0xf0] sm:$0xff] }
 0x1e5   :  { %1315 = vmatpush.msra.mxu3 %v3255_v26 }
 0x1eb   :  { %v3201_v48 = vpop.f32.mrf.mxu2 }
 0x1ec   :  { %2147 = vmatmul.msk.f32.gmra.mxu3 %vm1077_vm1, %v955_v45  ;;  %v1030_v45 = vpop.permute.xlu0 %1029 }
 0x1f3   :  { %v3205_v49 = vpop.f32.mrf.mxu2 }
 0x1f4   :  { %2148 = vmatmul.msk.f32.gmra.mxu3 %vm1077_vm1, %v957_v11  ;;  %v3260_v11 = vld [vmem:[%s4115_s15 + $0x60] sm:$0xff] }
 0x1f5   :  { %1280 = vmatpush.msrb.mxu2 %v3260_v11 }
 0x1fb   :  { %v1161_v29 = vpop.f32.mrf.mxu2 }
 0x1fc   :  { %2149 = vmatmul.msk.f32.gmra.mxu3 %vm1077_vm1, %v959_v18  ;;  %v1162_v18 = vadd.f32 %v1161_v29, %v1040_v36  ;;  %v1159_v29 = vadd.f32 %v3205_v49, %v1035_v53  ;;  %v1156_v49 = vadd.f32 %v3201_v48, %v1030_v45  ;;  %v3435_v36 = vld [vmem:[%s4115_s15 + $0x90] sm:$0xff]  ;;  %v3445_v53 = vld [vmem:[%s4116_s14 + $0x8] sm:$0xf] }
 0x1fd   :  { %4215 = vst [vmem:[#allocation12_spill] sm:$0xff] %v3435_v36  ;;  %v3493_v45 = vld [vmem:[%s4115_s15 + $0x150] sm:$0xff] }
 0x1fe   :  { %4216 = vst [vmem:[#allocation9_spill] sm:$0xff] %v3445_v53 }
 0x203   :  { %v1164_v31 = vpop.f32.mrf.mxu2 }
 0x204   :  { %2150 = vmatmul.msk.f32.gmra.mxu3 %vm1077_vm1, %v961_v19  ;;  %v1165_v12 = vadd.f32 %v1164_v31, %v1045_v24  ;;  %v3425_v24 = vld [vmem:[%s4115_s15 + $0x98] sm:$0xff] }
 0x205   :  { %4214 = vst [vmem:[#allocation2_spill] sm:$0xff] %v3425_v24 }
 0x20b   :  { %v1167_v8 = vpop.f32.mrf.mxu2 }
 0x20c   :  { %2151 = vmatmul.msk.f32.gmra.mxu3 %vm1077_vm1, %v963_v52  ;;  %v1168_v57 = vadd.f32 %v1167_v8, %v1050_v4  ;;  %v3270_v52 = vld [vmem:[%s4115_s15 + $0xe8] sm:$0xff]  ;;  %v3286_v8 = vld [vmem:[%s4115_s15 + $0xe0] sm:$0xff]  ;;  %v3386_v4 = vld [vmem:[%s4115_s15 + $0xb0] sm:$0xff] }
 0x20d   :  { %4205 = vst [vmem:[#allocation24_spill] sm:$0xff] %v3286_v8  ;;  %1316 = vmatpush.msra.mxu3 %v3270_v52 }
 0x20e   :  { %4211 = vst [vmem:[#allocation25_spill] sm:$0xff] %v3386_v4 }
 0x20f   :  { %1317 = vmatpush.msra.mxu3 %v3286_v8 }
 0x213   :  { %v1170_v32 = vpop.f32.mrf.mxu2 }
 0x214   :  { %2152 = vmatmul.msk.f32.gmra.mxu3 %vm1077_vm1, %v965_v59  ;;  %v1171_v43 = vadd.f32 %v1170_v32, %v1055_v56  ;;  %v1025_v59 = vpop.permute.xlu1 %1024  ;;  %v3291_v32 = vld [vmem:[%s4115_s15 + $0x50] sm:$0xff]  ;;  %v895_v56 = vld [vmem:[%s4115_s15 + $0x28] sm:$0xff] }
 0x215   :  { %v1153_v48 = vadd.f32 %v3195_v13, %v1025_v59  ;;  %v2261_v59 = vld [vmem:[%s4113_s6] sm:$0xff] }
 0x21b   :  { %v1173_v41 = vpop.f32.mrf.mxu2 }
 0x21c   :  { %2153 = vmatmul.msk.f32.gmra.mxu3 %vm1077_vm1, %v967_v60  ;;  %v1174_v27 = vadd.f32 %v1173_v41, %v1060_v21  ;;  %v3275_v60 = vld [vmem:[%s4115_s15 + $0x58] sm:$0xff]  ;;  %v3308_v41 = vld [vmem:[%s4115_s15 + $0x48] sm:$0xff] }
 0x21d   :  { %1281 = vmatpush.msrb.mxu2 %v3275_v60  ;;  %v3371_v21 = vld [vmem:[%s4115_s15 + $0xb8] sm:$0xff] }
 0x21e   :  { %4210 = vst [vmem:[#allocation3_spill] sm:$0xff] %v3371_v21 }
 0x21f   :  { %1282 = vmatpush.msrb.mxu2 %v3291_v32 }
 0x221   :  { %1283 = vmatpush.msrb.mxu2 %v3308_v41 }
 0x223   :  { %v1176_v44 = vpop.f32.mrf.mxu2 }
 0x224   :  { %v1177_v51 = vadd.f32 %v1176_v44, %v1065_v33  ;;  %v3325_v44 = vld [vmem:[%s4115_s15 + $0x40] sm:$0xff]  ;;  %v1010_v33 = vpop.permute.xlu1 %1009 }
 0x225   :  { %1284 = vmatpush.msrb.mxu2 %v3325_v44 }
 0x22b   :  { %v1179_v7 = vpop.f32.mrf.mxu2 }
 0x22c   :  { %v1180_v38 = vadd.f32 %v1179_v7, %v1070_v0  ;;  %v3342_v0 = vld [vmem:[%s4115_s15 + $0x38] sm:$0xff]  ;;  %v3359_v7 = vld [vmem:[%s4115_s15 + $0x30] sm:$0xff] }
 0x22d   :  { %1285 = vmatpush.msrb.mxu2 %v3342_v0 }
 0x22f   :  { %v3193_v40 = vpop.f32.mrf.mxu3  ;;  %1286 = vmatpush.msrb.mxu2 %v3359_v7 }
 0x231   :  { %1287 = vmatpush.msrb.mxu2 %v895_v56 }
 0x233   :  { %v1182_v6 = vpop.f32.mrf.mxu2 }
 0x234   :  { %v1183_v22 = vadd.f32 %v1182_v6, %v1075_v55  ;;  %v1015_v55 = vpop.permute.xlu0 %1014  ;;  %v894_v6 = vld [vmem:[%s4115_s15 + $0x20] sm:$0xff] }
 0x235   :  { %1288 = vmatpush.msrb.mxu2 %v894_v6 }
 0x237   :  { %v3197_v58 = vpop.f32.mrf.mxu3 }
 0x23f   :  { %v3199_v47 = vpop.f32.mrf.mxu3 }
 0x247   :  { %v3203_v37 = vpop.f32.mrf.mxu3 }
 0x24f   :  { %v3207_v20 = vpop.f32.mrf.mxu3 }
 0x257   :  { %v3209_v1 = vpop.f32.mrf.mxu3 }
 0x25f   :  { %v3211_v3 = vpop.f32.mrf.mxu3 }
 0x267   :  { %v1223_v50 = vpop.f32.mrf.mxu3 }
 0x268   :  { %v3280_v31 = vadd.f32 %v1223_v50, %v1162_v18  ;;  %v3297_v50 = vadd.f32 %v3211_v3, %v1159_v29  ;;  %v3314_v3 = vadd.f32 %v3209_v1, %v1156_v49  ;;  %v3331_v1 = vadd.f32 %v3207_v20, %v1153_v48  ;;  %v3532_v49 = vld [vmem:[%s4115_s15 + $0x80] sm:$0xff]  ;;  %v3544_v48 = vld [vmem:[%s4115_s15 + $0x138] sm:$0xff] }
 0x269   :  { %v2264_v18 = vmov 1   ;;  %v4132_v29 = vmov 2   ;;  %4219 = vst [vmem:[#allocation11_spill] sm:$0xff] %v3532_v49 }
 0x26a   :  { %2232 = vset.pattern.permute.xlu0 %v2264_v18  ;;  %2231 = vset.pattern.permute.xlu1 %v2264_v18 }
 0x26b   :  { %1338 = vperm.xlu0 %2232, %v2261_v59   ;;  %2234 = vset.pattern.permute.xlu2 %v4132_v29 }
 0x26c   :  { %1373 = vperm.xlu2 %2234, %v2261_v59  }
 0x26f   :  { %v1226_v14 = vpop.f32.mrf.mxu3 }
 0x270   :  { %v3263_v19 = vadd.f32 %v1226_v14, %v1165_v12  ;;  %v1020_v14 = vpop.permute.xlu2 %1019  ;;  %v3486_v12 = vld [vmem:[%s4115_s15 + $0x158] sm:$0xff] }
 0x271   :  { %v1150_v13 = vadd.f32 %v3191_v10, %v1020_v14  ;;  %v1147_v10 = vadd.f32 %v3189_v34, %v1015_v55  ;;  %v1144_v34 = vadd.f32 %v3183_v39, %v1010_v33  ;;  %v4218_v14 = vmov 0   ;;  %v1578_v55 = vld [vmem:[%s4118_s10 + $0x68] sm:$0xff]  ;;  %v3580_v33 = vld [vmem:[%s4115_s15 + $0x110] sm:$0xff] }
 0x273   :  { %v3348_v20 = vadd.f32 %v3203_v37, %v1150_v13  ;;  %v3365_v37 = vadd.f32 %v3199_v47, %v1147_v10  ;;  %v3380_v47 = vadd.f32 %v3197_v58, %v1144_v34  ;;  %v3399_v58 = vld [vmem:[%s4116_s14] sm:$0xff]  ;;  %2237 = vset.pattern.permute.xlu0 %v4218_v14  ;;  %v3556_v13 = vld [vmem:[%s4115_s15 + $0x128] sm:$0xff]  ;;  %v3575_v10 = vld [vmem:[%s4115_s15 + $0x118] sm:$0xff] }
 0x274   :  { %2236 = vset.pattern.permute.xlu2 %v4218_v14  ;;  %v3594_v34 = vld [vmem:[%s4115_s15 + $0x100] sm:$0xff] }
 0x277   :  { %v1229_v28 = vpop.f32.mrf.mxu3 }
 0x278   :  { %v3248_v63 = vadd.f32 %v1229_v28, %v1168_v57  ;;  %v3303_v28 = vld [vmem:[%s4115_s15 + $0xd8] sm:$0xff]  ;;  %v3471_v57 = vld [vmem:[%s4115_s15 + $0x168] sm:$0xff] }
 0x279   :  { %4206 = vst [vmem:[#allocation23_spill] sm:$0xff] %v3303_v28  ;;  %1318 = vmatpush.msra.mxu3 %v3303_v28 }
 0x27f   :  { %v1232_v46 = vpop.f32.mrf.mxu3 }
 0x280   :  { %v3234_v54 = vadd.f32 %v1232_v46, %v1171_v43  ;;  %v3320_v46 = vld [vmem:[%s4115_s15 + $0xd0] sm:$0xff]  ;;  %v3450_v43 = vld [vmem:[%s4115_s15 + $0x178] sm:$0xff] }
 0x281   :  { %4207 = vst [vmem:[#allocation7_spill] sm:$0xff] %v3320_v46  ;;  %1319 = vmatpush.msra.mxu3 %v3320_v46 }
 0x287   :  { %v1235_v35 = vpop.f32.mrf.mxu3 }
 0x288   :  { %v3221_v2 = vadd.f32 %v1235_v35, %v1174_v27  ;;  %v3337_v35 = vld [vmem:[%s4115_s15 + $0xc8] sm:$0xff]  ;;  %v890_v27 = vld [vmem:[%s4115_s15] sm:$0xff] }
 0x289   :  { %4208 = vst [vmem:[#allocation5_spill] sm:$0xff] %v3337_v35  ;;  %1320 = vmatpush.msra.mxu3 %v3337_v35 }
 0x28f   :  { %v1238_v17 = vpop.f32.mrf.mxu3 }
 0x290   :  { %v3218_v23 = vadd.f32 %v1238_v17, %v1177_v51  ;;  %v3354_v17 = vld [vmem:[%s4115_s15 + $0xc0] sm:$0xff]  ;;  %v891_v51 = vld [vmem:[%s4115_s15 + $0x8] sm:$0xff] }
 0x291   :  { %4209 = vst [vmem:[#allocation6_spill] sm:$0xff] %v3354_v17  ;;  %1321 = vmatpush.msra.mxu3 %v3354_v17 }
 0x293   :  { %1322 = vmatpush.msra.mxu3 %v3371_v21 }
 0x295   :  { %1323 = vmatpush.msra.mxu3 %v3386_v4 }
 0x297   :  { %v1241_v42 = vpop.f32.mrf.mxu3 }
 0x298   :  { %v3215_v15 = vadd.f32 %v1241_v42, %v1180_v38  ;;  %v1005_v42 = vpop.permute.xlu2 %1004  ;;  %v892_v38 = vld [vmem:[%s4115_s15 + $0x10] sm:$0xff] }
 0x299   :  { %v1141_v39 = vadd.f32 %v3177_v30, %v1005_v42  ;;  %v1576_v42 = vld [vmem:[%s4118_s10 + $0x58] sm:$0xff] }
 0x29b   :  { %v3394_v30 = vadd.f32 %v3193_v40, %v1141_v39  ;;  %v3414_v40 = vld [vmem:[%s4115_s15 + $0xa0] sm:$0xff] }
 0x29c   :  { %4213 = vst [vmem:[#allocation10_spill] sm:$0xff] %v3414_v40  ;;  %v985_v39 = vld [vmem:[%s4117_s7] sm:$0xff] }
 0x29d   :  { %1386 = vperm.xlu2 %2236, %v985_v39  }
 0x29f   :  { %v1244_v61 = vpop.f32.mrf.mxu3 }
 0x2a0   :  { %v3213_v16 = vadd.f32 %v1244_v61, %v1183_v22  ;;  %v3404_v22 = vld [vmem:[%s4115_s15 + $0xa8] sm:$0xff]  ;;  %v893_v61 = vld [vmem:[%s4115_s15 + $0x18] sm:$0xff]  ;;  %v1303_v39 = vpop.permute.xlu2 %1302 }
 0x2a1   :  { %4212 = vst [vmem:[#allocation4_spill] sm:$0xff] %v3404_v22  ;;  %1324 = vmatpush.msra.mxu3 %v3404_v22  ;;  %1289 = vmatpush.msrb.mxu2 %v893_v61 }
 0x2a2   :  { %1255 = vmatpush.msrb.mxu0 %v3213_v16 }
 0x2a3   :  { %1325 = vmatpush.msra.mxu3 %v3414_v40  ;;  %1290 = vmatpush.msrb.mxu2 %v892_v38 }
 0x2a4   :  { %1256 = vmatpush.msrb.mxu0 %v3215_v15 }
 0x2a5   :  { %1326 = vmatpush.msra.mxu3 %v3425_v24  ;;  %1291 = vmatpush.msrb.mxu2 %v891_v51 }
 0x2a6   :  { %1257 = vmatpush.msrb.mxu0 %v3218_v23 }
 0x2a7   :  { %1327 = vmatpush.msra.mxu3 %v3435_v36  ;;  %1292 = vmatpush.msrb.mxu2 %v890_v27 }
 0x2a8   :  { %1258 = vmatpush.msrb.mxu0 %v3221_v2 }
 0x2a9   :  { %1349 = vmatpush.msra.mxu2 %v3450_v43 }
 0x2aa   :  { %1259 = vmatpush.msrb.mxu0 %v3234_v54 }
 0x2ac   :  { %1260 = vmatpush.msrb.mxu0 %v3248_v63 }
 0x2ae   :  { %1261 = vmatpush.msrb.mxu0 %v3263_v19 }
 0x2b0   :  { %1262 = vmatpush.msrb.mxu0 %v3280_v31 }
 0x2b2   :  { %1263 = vmatpush.msrb.mxu0 %v3297_v50 }
 0x2b4   :  { %1264 = vmatpush.msrb.mxu0 %v3314_v3 }
 0x2b6   :  { %1265 = vmatpush.msrb.mxu0 %v3331_v1 }
 0x2b8   :  { %1266 = vmatpush.msrb.mxu0 %v3348_v20 }
 0x2ba   :  { %1267 = vmatpush.msrb.mxu0 %v3365_v37 }
 0x2bc   :  { %1268 = vmatpush.msrb.mxu0 %v3380_v47 }
 0x2be   :  { %1269 = vmatpush.msrb.mxu0 %v3394_v30 }
 0x2bf   :  { %2154 = vmatmul.msk.f32.vlgmr.msrb.gmra.mxu0 %vm1247_vm2, %v3399_v58 }
 0x2c0   :  { %1804 = vmatpush.msra.mxu0 %v3227_v25  ;;  %v3457_v25 = vld [vmem:[%s4115_s15 + $0x88] sm:$0xff] }
 0x2c1   :  { %4217 = vst [vmem:[#allocation8_spill] sm:$0xff] %v3457_v25  ;;  %1328 = vmatpush.msra.mxu3 %v3457_v25 }
 0x2c2   :  { %1805 = vmatpush.msra.mxu0 %v3232_v5  ;;  %v3462_v5 = vld [vmem:[%s4115_s15 + $0x170] sm:$0xff] }
 0x2c3   :  { %1350 = vmatpush.msra.mxu2 %v3462_v5  ;;  %1329 = vmatpush.msra.mxu3 %v3532_v49 }
 0x2c4   :  { %1806 = vmatpush.msra.mxu0 %v3241_v62  ;;  %v3479_v62 = vld [vmem:[%s4115_s15 + $0x160] sm:$0xff] }
 0x2c5   :  { %1351 = vmatpush.msra.mxu2 %v3471_v57 }
 0x2c6   :  { %1807 = vmatpush.msra.mxu0 %v3260_v11  ;;  %v3500_v11 = vld [vmem:[%s4115_s15 + $0x148] sm:$0xff] }
 0x2c7   :  { %2155 = vmatmul.msk.f32.gmra.mxu0 %vm1247_vm2, %v3445_v53  ;;  %1352 = vmatpush.msra.mxu2 %v3479_v62 }
 0x2c8   :  { %1808 = vmatpush.msra.mxu0 %v3275_v60  ;;  %v2262_v60 = vld [vmem:[%s4113_s6 + $0x8] sm:$0xf] }
 0x2c9   :  { %1353 = vmatpush.msra.mxu2 %v3486_v12  ;;  %1342 = vperm.xlu1 %2231, %v2262_v60  }
 0x2ca   :  { %1809 = vmatpush.msra.mxu0 %v3291_v32  ;;  %v986_v32 = vld [vmem:[%s4117_s7 + $0x8] sm:$0xf] }
 0x2cb   :  { %1354 = vmatpush.msra.mxu2 %v3493_v45 }
 0x2cc   :  { %1810 = vmatpush.msra.mxu0 %v3308_v41  ;;  %v3537_v41 = vld [vmem:[%s4115_s15 + $0x140] sm:$0xff] }
 0x2cd   :  { %1355 = vmatpush.msra.mxu2 %v3500_v11 }
 0x2ce   :  { %1811 = vmatpush.msra.mxu0 %v3325_v44  ;;  %v3549_v44 = vld [vmem:[%s4115_s15 + $0x130] sm:$0xff] }
 0x2cf   :  { %1356 = vmatpush.msra.mxu2 %v3537_v41 }
 0x2d0   :  { %1812 = vmatpush.msra.mxu0 %v3342_v0  ;;  %v3568_v0 = vld [vmem:[%s4115_s15 + $0x120] sm:$0xff] }
 0x2d1   :  { %2233 = vset.pattern.permute.xlu1 %v4132_v29  ;;  %1357 = vmatpush.msra.mxu2 %v3544_v48 }
 0x2d2   :  { %1813 = vmatpush.msra.mxu0 %v3359_v7  ;;  %1377 = vperm.xlu1 %2233, %v2262_v60   ;;  %v3587_v7 = vld [vmem:[%s4115_s15 + $0x108] sm:$0xff] }
 0x2d3   :  { %1358 = vmatpush.msra.mxu2 %v3549_v44  ;;  %v1581_v60 = vld [vmem:[%s4119_s11 + $0x8] sm:$0xf] }
 0x2d4   :  { %1814 = vmatpush.msra.mxu0 %v895_v56  ;;  %v1573_v56 = vld [vmem:[%s4118_s10 + $0x40] sm:$0xff] }
 0x2d5   :  { %1359 = vmatpush.msra.mxu2 %v3556_v13 }
 0x2d6   :  { %1815 = vmatpush.msra.mxu0 %v894_v6  ;;  %v1570_v6 = vld [vmem:[%s4118_s10 + $0x28] sm:$0xff] }
 0x2d7   :  { %1360 = vmatpush.msra.mxu2 %v3568_v0 }
 0x2d8   :  { %1816 = vmatpush.msra.mxu0 %v893_v61  ;;  %v1577_v61 = vld [vmem:[%s4118_s10 + $0x60] sm:$0xff] }
 0x2d9   :  { %1361 = vmatpush.msra.mxu2 %v3575_v10  ;;  %1661 = vperm.xlu2 %2236, %v1577_v61  }
 0x2da   :  { %1817 = vmatpush.msra.mxu0 %v892_v38  ;;  %2235 = vset.pattern.permute.xlu1 %v4218_v14 }
 0x2db   :  { %1391 = vperm.xlu1 %2235, %v986_v32   ;;  %1362 = vmatpush.msra.mxu2 %v3580_v33  ;;  %v1572_v32 = vld [vmem:[%s4118_s10 + $0x38] sm:$0xff] }
 0x2dc   :  { %1818 = vmatpush.msra.mxu0 %v891_v51  ;;  %v1567_v51 = vld [vmem:[%s4118_s10 + $0x10] sm:$0xff] }
 0x2dd   :  { %1363 = vmatpush.msra.mxu2 %v3587_v7 }
 0x2de   :  { %1819 = vmatpush.msra.mxu0 %v890_v27  ;;  %v1575_v27 = vld [vmem:[%s4118_s10 + $0x50] sm:$0xff] }
 0x2df   :  { %1364 = vmatpush.msra.mxu2 %v3594_v34 }
 0x2e0   :  { %1876 = vmatpush.msrb.mxu0 %v3450_v43 }
 0x2e1   :  { %1651 = vperm.xlu2 %2236, %v1575_v27  }
 0x2e2   :  { %1877 = vmatpush.msrb.mxu0 %v3462_v5 }
 0x2e3   :  { %1666 = vperm.xlu1 %2235, %v1578_v55   ;;  %v1569_v55 = vld [vmem:[%s4118_s10 + $0x20] sm:$0xff] }
 0x2e4   :  { %1878 = vmatpush.msrb.mxu0 %v3471_v57 }
 0x2e6   :  { %1879 = vmatpush.msrb.mxu0 %v3479_v62 }
 0x2e8   :  { %1880 = vmatpush.msrb.mxu0 %v3486_v12 }
 0x2e9   :  { %1636 = vperm.xlu2 %2236, %v1572_v32  }
 0x2ea   :  { %1881 = vmatpush.msrb.mxu0 %v3493_v45 }
 0x2eb   :  { %1656 = vperm.xlu1 %2235, %v1576_v42   ;;  %v1566_v42 = vld [vmem:[%s4118_s10 + $0x8] sm:$0xff] }
 0x2ec   :  { %1882 = vmatpush.msrb.mxu0 %v3500_v11 }
 0x2ee   :  { %1883 = vmatpush.msrb.mxu0 %v3537_v41 }
 0x2f0   :  { %1884 = vmatpush.msrb.mxu0 %v3544_v48 }
 0x2f1   :  { %1621 = vperm.xlu2 %2236, %v1569_v55  }
 0x2f2   :  { %1885 = vmatpush.msrb.mxu0 %v3549_v44 }
 0x2f3   :  { %1641 = vperm.xlu1 %2235, %v1573_v56  }
 0x2f4   :  { %1886 = vmatpush.msrb.mxu0 %v3556_v13 }
 0x2f6   :  { %1887 = vmatpush.msrb.mxu0 %v3568_v0 }
 0x2f8   :  { %1888 = vmatpush.msrb.mxu0 %v3575_v10 }
 0x2f9   :  { %1606 = vperm.xlu2 %2236, %v1566_v42  }
 0x2fa   :  { %1889 = vmatpush.msrb.mxu0 %v3580_v33 }
 0x2fb   :  { %1626 = vperm.xlu1 %2235, %v1570_v6   ;;  %v1308_v6 = vpop.permute.xlu0 %1307 }
 0x2fc   :  { %1890 = vmatpush.msrb.mxu0 %v3587_v7 }
 0x2fe   :  { %1891 = vmatpush.msrb.mxu0 %v3594_v34 }
 0x301   :  { %2238 = vset.pattern.permute.xlu2 %v2264_v18 }
 0x302   :  { %1869 = vperm.xlu2 %2238, %v1581_v60  }
 0x303   :  { %1611 = vperm.xlu1 %2235, %v1567_v51   ;;  %v1339_v27 = vpop.permute.xlu0 %1338 }
 0x30a   :  { %2240 = vset.pattern.permute.xlu2 %v4132_v29 }
 0x30b   :  { %1834 = vperm.xlu1 %2235, %v1581_v60   ;;  %1904 = vperm.xlu2 %2240, %v1581_v60  }
 0x313   :  { %2239 = vset.pattern.permute.xlu1 %v2264_v18  ;;  %2243 = vset.pattern.permute.xlu2 %v4218_v14 }
 0x33b   :  { %v1343_v61 = vpop.permute.xlu1 %1342 }
 0x33c   :  { %v1271_v38 = vpop.f32.mrf.mxu0 }
 0x33d   :  { %1293 = vmatmul.f32.vlgmr.msrb.gmra.mxu2 %v1271_v38  ;;  %1330 = vmatmul.f32.vlgmr.msra.gmra.mxu3 %v1271_v38 }
 0x344   :  { %v1274_v59 = vpop.f32.mrf.mxu0  ;;  %v1378_v36 = vpop.permute.xlu1 %1377 }
 0x345   :  { %1296 = vmatmul.f32.gmra.mxu2 %v1274_v59  ;;  %1333 = vmatmul.f32.gmra.mxu3 %v1274_v59 }
 0x34d   :  { %1365 = vmatmul.f32.vlgmr.msra.gmra.mxu2 %v1271_v38  ;;  %v1392_v53 = vpop.permute.xlu1 %1391 }
 0x355   :  { %1368 = vmatmul.f32.gmra.mxu2 %v1274_v59  ;;  %v1374_v59 = vpop.permute.xlu2 %1373 }
 0x35d   :  { %v1387_v29 = vpop.permute.xlu2 %1386 }
 0x3c0   :  { %v1294_v56 = vpop.f32.mrf.mxu2  ;;  %v1331_v38 = vpop.f32.mrf.mxu3 }
 0x3c1   :  { %v1310_v32 = vmul.f32 %v1303_v39, %v1294_v56  ;;  %v1345_v55 = vmul.f32 %v1339_v27, %v1331_v38 }
 0x3c3   :  { %v1347_v42 = vadd.f32 %v1345_v55, %v1310_v32  ;;  %v1000_v32 = vld [vmem:[%s4120_s8 + $0x68] sm:$0xff]  ;;  %v1001_v55 = vld [vmem:[%s4120_s8 + $0x70] sm:$0xff] }
 0x3c8   :  { %v1297_v51 = vpop.f32.mrf.mxu2  ;;  %v1334_v18 = vpop.f32.mrf.mxu3 }
 0x3c9   :  { %v1311_v60 = vmul.f32 %v1308_v6, %v1297_v51  ;;  %v1346_v40 = vmul.f32 %v1343_v61, %v1334_v18  ;;  %v997_v61 = vld [vmem:[%s4120_s8 + $0x50] sm:$0xff]  ;;  %v998_v51 = vld [vmem:[%s4120_s8 + $0x58] sm:$0xff] }
 0x3cb   :  { %v1348_v17 = vadd.f32 %v1346_v40, %v1311_v60 }
 0x3d0   :  { %v1366_v49 = vpop.f32.mrf.mxu2 }
 0x3d1   :  { %v1380_v25 = vmul.f32 %v1374_v59, %v1366_v49  ;;  %v999_v59 = vld [vmem:[%s4120_s8 + $0x60] sm:$0xff] }
 0x3d3   :  { %v1382_v24 = vadd.f32 %v1380_v25, %v1347_v42 }
 0x3d5   :  { %v1394_v22 = vadd.f32 %v1387_v29, %v1382_v24 }
 0x3d7   :  { %v1396_v4 = vsub.f32 0.0, %v1394_v22 }
 0x3d8   :  { %v1369_v21 = vpop.f32.mrf.mxu2 }
 0x3d9   :  { %v1381_v35 = vmul.f32 %v1378_v36, %v1369_v21  ;;  %v1398_v46 = vmul.f32 1.442695, %v1396_v4  ;;  %v992_v21 = vld [vmem:[%s4120_s8 + $0x28] sm:$0xff]  ;;  %v993_v4 = vld [vmem:[%s4120_s8 + $0x30] sm:$0xff]  ;;  %v995_v36 = vld [vmem:[%s4120_s8 + $0x40] sm:$0xff] }
 0x3db   :  { %v1383_v28 = vadd.f32 %v1381_v35, %v1348_v17  ;;  %2245 = vpow2.f32 %v1398_v46  ;;  %v988_v46 = vld [vmem:[%s4120_s8 + $0x8] sm:$0xff]  ;;  %v990_v35 = vld [vmem:[%s4120_s8 + $0x18] sm:$0xff]  ;;  %v991_v17 = vld [vmem:[%s4120_s8 + $0x20] sm:$0xff] }
 0x3dd   :  { %v1395_v8 = vadd.f32 %v1392_v53, %v1383_v28  ;;  %v987_v28 = vld [vmem:[%s4120_s8] sm:$0xff]  ;;  %v996_v53 = vld [vmem:[%s4120_s8 + $0x48] sm:$0xff] }
 0x3df   :  { %v1397_v56 = vsub.f32 0.0, %v1395_v8 }
 0x3e1   :  { %v1400_v39 = vmul.f32 1.442695, %v1397_v56  ;;  %v2246_v49 = vpop.eup %2245 }
 0x3e2   :  { %v1402_v38 = vadd.f32 1.0, %v2246_v49 }
 0x3e3   :  { %2247 = vpow2.f32 %v1400_v39 }
 0x3e4   :  { %2249 = vrcp.f32 %v1402_v38 }
 0x3e9   :  { %v2248_v27 = vpop.eup %2247 }
 0x3ea   :  { %v1403_v25 = vadd.f32 1.0, %v2248_v27  ;;  %v2250_v6 = vpop.eup %2249 }
 0x3eb   :  { %v1406_v40 = vmul.f32 %v2250_v6, %v1394_v22  ;;  %v994_v22 = vld [vmem:[%s4120_s8 + $0x38] sm:$0xff] }
 0x3ec   :  { %2251 = vrcp.f32 %v1403_v25 }
 0x3f2   :  { %v2252_v24 = vpop.eup %2251 }
 0x3f3   :  { %v1407_v29 = vmul.f32 %v2252_v24, %v1395_v8  ;;  %v989_v8 = vld [vmem:[%s4120_s8 + $0x10] sm:$0xff] }
 0x3f5   :  { %2156 = vmatpush.msk.msrb.mxu3 %vm1454_vm3, %v1407_v29 }
 0x3f7   :  { %1473 = vmatpush.msrb.mxu3 %v1406_v40 }
 0x3f8   :  { %2157 = vmatmul.msk.f32.vlgmr.msrb.gmra.mxu3 %vm1408_vm4, %v987_v28  ;;  %v1579_v28 = vld [vmem:[%s4118_s10 + $0x70] sm:$0xff] }
 0x3f9   :  { %1671 = vperm.xlu0 %2237, %v1579_v28  }
 0x400   :  { %2158 = vmatmul.msk.f32.gmra.mxu3 %vm1408_vm4, %v988_v46 }
 0x408   :  { %2159 = vmatmul.msk.f32.gmra.mxu3 %vm1408_vm4, %v989_v8  ;;  %v1574_v8 = vld [vmem:[%s4118_s10 + $0x48] sm:$0xff] }
 0x409   :  { %1646 = vperm.xlu0 %2237, %v1574_v8  }
 0x410   :  { %2160 = vmatmul.msk.f32.gmra.mxu3 %vm1408_vm4, %v990_v35 }
 0x418   :  { %2161 = vmatmul.msk.f32.gmra.mxu3 %vm1408_vm4, %v991_v17 }
 0x420   :  { %2162 = vmatmul.msk.f32.gmra.mxu3 %vm1408_vm4, %v992_v21 }
 0x428   :  { %2163 = vmatmul.msk.f32.gmra.mxu3 %vm1408_vm4, %v993_v4  ;;  %v1571_v4 = vld [vmem:[%s4118_s10 + $0x30] sm:$0xff] }
 0x429   :  { %1631 = vperm.xlu0 %2237, %v1571_v4  }
 0x430   :  { %2164 = vmatmul.msk.f32.gmra.mxu3 %vm1408_vm4, %v994_v22 }
 0x438   :  { %2165 = vmatmul.msk.f32.gmra.mxu3 %vm1408_vm4, %v995_v36 }
 0x440   :  { %2166 = vmatmul.msk.f32.gmra.mxu3 %vm1408_vm4, %v996_v53 }
 0x448   :  { %2167 = vmatmul.msk.f32.gmra.mxu3 %vm1408_vm4, %v997_v61 }
 0x450   :  { %2168 = vmatmul.msk.f32.gmra.mxu3 %vm1408_vm4, %v998_v51 }
 0x458   :  { %2169 = vmatmul.msk.f32.gmra.mxu3 %vm1408_vm4, %v999_v59 }
 0x460   :  { %2170 = vmatmul.msk.f32.gmra.mxu3 %vm1408_vm4, %v1000_v32 }
 0x468   :  { %2171 = vmatmul.msk.f32.gmra.mxu3 %vm1408_vm4, %v1001_v55 }
 0x47b   :  { %v1475_v42 = vpop.f32.mrf.mxu3 }
 0x483   :  { %v1478_v18 = vpop.f32.mrf.mxu3 }
 0x48b   :  { %v1481_v60 = vpop.f32.mrf.mxu3 }
 0x493   :  { %v1484_v56 = vpop.f32.mrf.mxu3 }
 0x49b   :  { %v1487_v39 = vpop.f32.mrf.mxu3 }
 0x4a3   :  { %v1490_v49 = vpop.f32.mrf.mxu3 }
 0x4ab   :  { %v1493_v38 = vpop.f32.mrf.mxu3 }
 0x4ac   :  { %v3752_v55 = vadd.f32 %v1493_v38, %v3297_v50  ;;  %v3767_v50 = vadd.f32 %v1487_v39, %v3331_v1  ;;  %v3785_v39 = vadd.f32 %v1478_v18, %v3380_v47 }
 0x4ae   :  { %v4151_v38 = vmax.f32 %v3752_v55, 0.0  ;;  %v1539_v1 = vmax.f32 %v3767_v50, 0.0 }
 0x4b3   :  { %v1496_v27 = vpop.f32.mrf.mxu3 }
 0x4bb   :  { %v1499_v25 = vpop.f32.mrf.mxu3 }
 0x4c3   :  { %v1502_v6 = vpop.f32.mrf.mxu3 }
 0x4cb   :  { %v1505_v24 = vpop.f32.mrf.mxu3 }
 0x4d3   :  { %v1508_v29 = vpop.f32.mrf.mxu3 }
 0x4d4   :  { %v3719_v53 = vadd.f32 %v1508_v29, %v3221_v2  ;;  %v1568_v2 = vld [vmem:[%s4118_s10 + $0x18] sm:$0xff] }
 0x4d5   :  { %1616 = vperm.xlu0 %2237, %v1568_v2  }
 0x4d6   :  { %v4146_v51 = vmax.f32 %v3719_v53, 0.0 }
 0x4db   :  { %v1511_v40 = vpop.f32.mrf.mxu3 }
 0x4dc   :  { %v3715_v22 = vadd.f32 %v1511_v40, %v3218_v23  ;;  %v3731_v23 = vadd.f32 %v1502_v6, %v3248_v63  ;;  %v3746_v63 = vadd.f32 %v1496_v27, %v3280_v31  ;;  %v1565_v31 = vld [vmem:[%s4118_s10] sm:$0xff]  ;;  %v3779_v27 = vadd.f32 %v1481_v60, %v3365_v37 }
 0x4dd   :  { %1601 = vperm.xlu0 %2237, %v1565_v31   ;;  %v1536_v37 = vmax.f32 %v3785_v39, 0.0 }
 0x4de   :  { %v4148_v32 = vmax.f32 %v3731_v23, 0.0  ;;  %v4150_v6 = vmax.f32 %v3746_v63, 0.0 }
 0x4e3   :  { %v1514_v46 = vpop.f32.mrf.mxu3 }
 0x4e4   :  { %v3706_v17 = vadd.f32 %v1514_v46, %v3215_v15  ;;  %v4145_v15 = vmax.f32 %v3715_v22, 0.0 }
 0x4e6   :  { %v4144_v61 = vmax.f32 %v3706_v17, 0.0 }
 0x4eb   :  { %v1517_v35 = vpop.f32.mrf.mxu3 }
 0x4ec   :  { %v3709_v21 = vadd.f32 %v1517_v35, %v3213_v16  ;;  %v3725_v16 = vadd.f32 %v1505_v24, %v3234_v54  ;;  %v3740_v54 = vadd.f32 %v1499_v25, %v3263_v19  ;;  %v3758_v25 = vadd.f32 %v1490_v49, %v3314_v3 }
 0x4ed   :  { %v3773_v3 = vadd.f32 %v1484_v56, %v3348_v20  ;;  %v3791_v20 = vadd.f32 %v1475_v42, %v3394_v30  ;;  %v1537_v56 = vmax.f32 %v3779_v27, 0.0  ;;  %v1550_v30 = vld [vmem:[%s4121_s9] sm:$0xff]  ;;  %v1551_v42 = vld [vmem:[%s4121_s9 + $0x8] sm:$0xff] }
 0x4ee   :  { %v4143_v36 = vmax.f32 %v3709_v21, 0.0  ;;  %v4147_v59 = vmax.f32 %v3725_v16, 0.0  ;;  %v4149_v19 = vmax.f32 %v3740_v54, 0.0  ;;  %v4152_v49 = vmax.f32 %v3758_v25, 0.0 }
 0x4ef   :  { %v1538_v24 = vmax.f32 %v3773_v3, 0.0  ;;  %v1535_v47 = vmax.f32 %v3791_v20, 0.0 }
 0x4f0   :  { %1720 = vmatpush.msrb.mxu2 %v4143_v36 }
 0x4f2   :  { %1721 = vmatpush.msrb.mxu2 %v4144_v61 }
 0x4f4   :  { %1722 = vmatpush.msrb.mxu2 %v4145_v15 }
 0x4f6   :  { %1723 = vmatpush.msrb.mxu2 %v4146_v51 }
 0x4f8   :  { %1724 = vmatpush.msrb.mxu2 %v4147_v59 }
 0x4fa   :  { %1725 = vmatpush.msrb.mxu2 %v4148_v32 }
 0x4fc   :  { %1726 = vmatpush.msrb.mxu2 %v4149_v19 }
 0x4fe   :  { %1727 = vmatpush.msrb.mxu2 %v4150_v6 }
 0x500   :  { %1728 = vmatpush.msrb.mxu2 %v4151_v38 }
 0x502   :  { %1729 = vmatpush.msrb.mxu2 %v4152_v49 }
 0x504   :  { %1730 = vmatpush.msrb.mxu2 %v1539_v1 }
 0x506   :  { %1731 = vmatpush.msrb.mxu2 %v1538_v24 }
 0x508   :  { %1732 = vmatpush.msrb.mxu2 %v1537_v56 }
 0x50a   :  { %1733 = vmatpush.msrb.mxu2 %v1536_v37 }
 0x50c   :  { %1734 = vmatpush.msrb.mxu2 %v1535_v47 }
 0x50d   :  { %2172 = vmatmul.msk.f32.vlgmr.msrb.gmra.mxu2 %vm1247_vm2, %v1550_v30  ;;  %v1667_v30 = vpop.permute.xlu1 %1666 }
 0x50e   :  { %2209 = vmatpush.msra.mxu2 %v3450_v43  ;;  %v1552_v43 = vld [vmem:[%s4121_s9 + $0x10] sm:$0xff] }
 0x510   :  { %2210 = vmatpush.msra.mxu2 %v3462_v5  ;;  %v1553_v5 = vld [vmem:[%s4121_s9 + $0x18] sm:$0xff] }
 0x512   :  { %2211 = vmatpush.msra.mxu2 %v3471_v57  ;;  %v1554_v57 = vld [vmem:[%s4121_s9 + $0x20] sm:$0xff] }
 0x514   :  { %2212 = vmatpush.msra.mxu2 %v3479_v62  ;;  %v1555_v62 = vld [vmem:[%s4121_s9 + $0x28] sm:$0xff] }
 0x515   :  { %2173 = vmatmul.msk.f32.gmra.mxu2 %vm1247_vm2, %v1551_v42 }
 0x516   :  { %2213 = vmatpush.msra.mxu2 %v3486_v12  ;;  %v1556_v12 = vld [vmem:[%s4121_s9 + $0x30] sm:$0xff] }
 0x518   :  { %2214 = vmatpush.msra.mxu2 %v3493_v45  ;;  %v1557_v45 = vld [vmem:[%s4121_s9 + $0x38] sm:$0xff] }
 0x51a   :  { %2215 = vmatpush.msra.mxu2 %v3500_v11  ;;  %v1558_v11 = vld [vmem:[%s4121_s9 + $0x40] sm:$0xff] }
 0x51c   :  { %2216 = vmatpush.msra.mxu2 %v3537_v41  ;;  %v1559_v41 = vld [vmem:[%s4121_s9 + $0x48] sm:$0xff] }
 0x51d   :  { %2174 = vmatmul.msk.f32.gmra.mxu2 %vm1247_vm2, %v1552_v43  ;;  %v1662_v43 = vpop.permute.xlu2 %1661 }
 0x51e   :  { %2217 = vmatpush.msra.mxu2 %v3544_v48  ;;  %v1560_v48 = vld [vmem:[%s4121_s9 + $0x50] sm:$0xff] }
 0x520   :  { %2218 = vmatpush.msra.mxu2 %v3549_v44  ;;  %v1561_v44 = vld [vmem:[%s4121_s9 + $0x58] sm:$0xff] }
 0x522   :  { %2219 = vmatpush.msra.mxu2 %v3556_v13  ;;  %v1580_v13 = vld [vmem:[%s4119_s11] sm:$0xff] }
 0x523   :  { %1829 = vperm.xlu0 %2237, %v1580_v13   ;;  %1865 = vperm.xlu1 %2239, %v1580_v13  }
 0x524   :  { %2220 = vmatpush.msra.mxu2 %v3568_v0  ;;  %v1562_v0 = vld [vmem:[%s4121_s9 + $0x60] sm:$0xff] }
 0x525   :  { %2175 = vmatmul.msk.f32.gmra.mxu2 %vm1247_vm2, %v1553_v5  ;;  %v1672_v5 = vpop.permute.xlu0 %1671 }
 0x526   :  { %2221 = vmatpush.msra.mxu2 %v3575_v10  ;;  %v1563_v10 = vld [vmem:[%s4121_s9 + $0x68] sm:$0xff] }
 0x528   :  { %2222 = vmatpush.msra.mxu2 %v3580_v33  ;;  %v4220_v33 = vmov 2  }
 0x52a   :  { %2223 = vmatpush.msra.mxu2 %v3587_v7  ;;  %v1564_v7 = vld [vmem:[%s4121_s9 + $0x70] sm:$0xff] }
 0x52b   :  { %2241 = vset.pattern.permute.xlu0 %v4220_v33  ;;  %2242 = vset.pattern.permute.xlu1 %v4218_v14 }
 0x52c   :  { %2224 = vmatpush.msra.mxu2 %v3594_v34  ;;  %1900 = vperm.xlu0 %2241, %v1580_v13  }
 0x52d   :  { %2176 = vmatmul.msk.f32.gmra.mxu2 %vm1247_vm2, %v1554_v57 }
 0x534   :  { %2244 = vset.pattern.permute.xlu0 %v4218_v14  ;;  %v1657_v14 = vpop.permute.xlu1 %1656 }
 0x535   :  { %2177 = vmatmul.msk.f32.gmra.mxu2 %vm1247_vm2, %v1555_v62  ;;  %v1652_v62 = vpop.permute.xlu2 %1651 }
 0x53d   :  { %2178 = vmatmul.msk.f32.gmra.mxu2 %vm1247_vm2, %v1556_v12  ;;  %v1647_v12 = vpop.permute.xlu0 %1646  ;;  %v1637_v13 = vpop.permute.xlu2 %1636 }
 0x545   :  { %2179 = vmatmul.msk.f32.gmra.mxu2 %vm1247_vm2, %v1557_v45 }
 0x54d   :  { %2180 = vmatmul.msk.f32.gmra.mxu2 %vm1247_vm2, %v1558_v11 }
 0x555   :  { %2181 = vmatmul.msk.f32.gmra.mxu2 %vm1247_vm2, %v1559_v41 }
 0x55d   :  { %2182 = vmatmul.msk.f32.gmra.mxu2 %vm1247_vm2, %v1560_v48  ;;  %v1642_v48 = vpop.permute.xlu1 %1641 }
 0x565   :  { %2183 = vmatmul.msk.f32.gmra.mxu2 %vm1247_vm2, %v1561_v44 }
 0x56d   :  { %2184 = vmatmul.msk.f32.gmra.mxu2 %vm1247_vm2, %v1562_v0  ;;  %v1632_v0 = vpop.permute.xlu0 %1631 }
 0x575   :  { %2185 = vmatmul.msk.f32.gmra.mxu2 %vm1247_vm2, %v1563_v10 }
 0x57d   :  { %2186 = vmatmul.msk.f32.gmra.mxu2 %vm1247_vm2, %v1564_v7 }
 0x590   :  { %v1736_v34 = vpop.f32.mrf.mxu2 }
 0x598   :  { %v1739_v18 = vpop.f32.mrf.mxu2 }
 0x5a0   :  { %v1742_v60 = vpop.f32.mrf.mxu2 }
 0x5a8   :  { %v1745_v29 = vpop.f32.mrf.mxu2 }
 0x5b0   :  { %v1748_v40 = vpop.f32.mrf.mxu2 }
 0x5b8   :  { %v1751_v28 = vpop.f32.mrf.mxu2 }
 0x5c0   :  { %v1754_v46 = vpop.f32.mrf.mxu2 }
 0x5c8   :  { %v1757_v8 = vpop.f32.mrf.mxu2 }
 0x5d0   :  { %v1760_v35 = vpop.f32.mrf.mxu2 }
 0x5d8   :  { %v1763_v4 = vpop.f32.mrf.mxu2 }
 0x5d9   :  { %v3900_v7 = vadd.f32 %v1763_v4, %v1647_v12 }
 0x5e0   :  { %v1766_v2 = vpop.f32.mrf.mxu2 }
 0x5e1   :  { %v3897_v33 = vadd.f32 %v1766_v2, %v1652_v62 }
 0x5e8   :  { %v1769_v31 = vpop.f32.mrf.mxu2 }
 0x5e9   :  { %v3894_v10 = vadd.f32 %v1769_v31, %v1657_v14  ;;  %v1622_v31 = vpop.permute.xlu2 %1621 }
 0x5ea   :  { %v3915_v4 = vadd.f32 %v1748_v40, %v1622_v31  ;;  %v4225_v40 = vld [vmem:[#allocation5_spill] sm:$0xff]  ;;  %v1583_v31 = vld [vmem:[%s4122_s12 + $0x8] sm:$0xf] }
 0x5eb   :  { %1918 = vperm.xlu1 %2242, %v1583_v31  }
 0x5f0   :  { %v1772_v42 = vpop.f32.mrf.mxu2 }
 0x5f1   :  { %v3891_v44 = vadd.f32 %v1772_v42, %v1662_v43  ;;  %v1627_v42 = vpop.permute.xlu1 %1626  ;;  %v3906_v43 = vadd.f32 %v1757_v8, %v1637_v13  ;;  %v4232_v13 = vld [vmem:[#allocation12_spill] sm:$0xff] }
 0x5f2   :  { %v3912_v2 = vadd.f32 %v1751_v28, %v1627_v42  ;;  %v4234_v42 = vld [vmem:[#allocation11_spill] sm:$0xff] }
 0x5f8   :  { %v1775_v57 = vpop.f32.mrf.mxu2 }
 0x5f9   :  { %v3888_v41 = vadd.f32 %v1775_v57, %v1667_v30  ;;  %v3903_v30 = vadd.f32 %v1760_v35, %v1642_v48  ;;  %v3909_v57 = vadd.f32 %v1754_v46, %v1632_v0  ;;  %v1612_v8 = vpop.permute.xlu1 %1611  ;;  %v1607_v46 = vpop.permute.xlu2 %1606  ;;  %v4231_v48 = vld [vmem:[#allocation2_spill] sm:$0xff]  ;;  %v4233_v0 = vld [vmem:[#allocation8_spill] sm:$0xff] }
 0x5fa   :  { %v3921_v14 = vadd.f32 %v1742_v60, %v1612_v8  ;;  %v3924_v12 = vadd.f32 %v1739_v18, %v1607_v46  ;;  %v4221_v60 = vld [vmem:[#allocation24_spill] sm:$0xff]  ;;  %v4222_v18 = vld [vmem:[#allocation9_spill] sm:$0xff] }
 0x600   :  { %v1778_v45 = vpop.f32.mrf.mxu2 }
 0x601   :  { %v3886_v11 = vadd.f32 %v1778_v45, %v1672_v5  ;;  %v1617_v5 = vpop.permute.xlu0 %1616  ;;  %v4226_v45 = vld [vmem:[#allocation6_spill] sm:$0xff] }
 0x602   :  { %v3918_v35 = vadd.f32 %v1745_v29, %v1617_v5  ;;  %v4224_v29 = vld [vmem:[#allocation7_spill] sm:$0xff]  ;;  %v1582_v5 = vld [vmem:[%s4122_s12] sm:$0xff] }
 0x603   :  { %1782 = vmatpush.msrb.mxu1 %v3886_v11  ;;  %1913 = vperm.xlu2 %2243, %v1582_v5  }
 0x605   :  { %1783 = vmatpush.msrb.mxu1 %v3888_v41 }
 0x607   :  { %1784 = vmatpush.msrb.mxu1 %v3891_v44 }
 0x609   :  { %1785 = vmatpush.msrb.mxu1 %v3894_v10  ;;  %v1602_v62 = vpop.permute.xlu0 %1601 }
 0x60a   :  { %v3927_v28 = vadd.f32 %v1736_v34, %v1602_v62  ;;  %v4223_v34 = vld [vmem:[#allocation23_spill] sm:$0xff]  ;;  %v1870_v62 = vpop.permute.xlu2 %1869 }
 0x60b   :  { %1786 = vmatpush.msrb.mxu1 %v3897_v33 }
 0x60d   :  { %1787 = vmatpush.msrb.mxu1 %v3900_v7 }
 0x60f   :  { %1788 = vmatpush.msrb.mxu1 %v3903_v30 }
 0x611   :  { %1789 = vmatpush.msrb.mxu1 %v3906_v43 }
 0x613   :  { %1790 = vmatpush.msrb.mxu1 %v3909_v57 }
 0x615   :  { %1791 = vmatpush.msrb.mxu1 %v3912_v2 }
 0x617   :  { %1792 = vmatpush.msrb.mxu1 %v3915_v4 }
 0x619   :  { %1793 = vmatpush.msrb.mxu1 %v3918_v35 }
 0x61b   :  { %1794 = vmatpush.msrb.mxu1 %v3921_v14 }
 0x61d   :  { %1795 = vmatpush.msrb.mxu1 %v3924_v12 }
 0x61f   :  { %1796 = vmatpush.msrb.mxu1 %v3927_v28 }
 0x620   :  { %2187 = vmatmul.msk.f32.vlgmr.msrb.gmra.mxu1 %vm1247_vm2, %v3399_v58  ;;  %v4227_v58 = vld [vmem:[#allocation3_spill] sm:$0xff] }
 0x621   :  { %1841 = vmatpush.msra.mxu1 %v3246_v9  ;;  %v4228_v9 = vld [vmem:[#allocation25_spill] sm:$0xff] }
 0x623   :  { %1842 = vmatpush.msra.mxu1 %v3255_v26  ;;  %v4229_v26 = vld [vmem:[#allocation4_spill] sm:$0xff] }
 0x625   :  { %1843 = vmatpush.msra.mxu1 %v3270_v52  ;;  %v4230_v52 = vld [vmem:[#allocation10_spill] sm:$0xff] }
 0x627   :  { %1844 = vmatpush.msra.mxu1 %v4221_v60 }
 0x628   :  { %2188 = vmatmul.msk.f32.gmra.mxu1 %vm1247_vm2, %v4222_v18 }
 0x629   :  { %1845 = vmatpush.msra.mxu1 %v4223_v34  ;;  %v1835_v34 = vpop.permute.xlu1 %1834 }
 0x62b   :  { %1846 = vmatpush.msra.mxu1 %v4224_v29  ;;  %v1830_v29 = vpop.permute.xlu0 %1829 }
 0x62d   :  { %1847 = vmatpush.msra.mxu1 %v4225_v40 }
 0x62f   :  { %1848 = vmatpush.msra.mxu1 %v4226_v45  ;;  %v1905_v45 = vpop.permute.xlu2 %1904 }
 0x631   :  { %1849 = vmatpush.msra.mxu1 %v4227_v58  ;;  %v1866_v58 = vpop.permute.xlu1 %1865 }
 0x633   :  { %1850 = vmatpush.msra.mxu1 %v4228_v9 }
 0x635   :  { %1851 = vmatpush.msra.mxu1 %v4229_v26 }
 0x637   :  { %1852 = vmatpush.msra.mxu1 %v4230_v52 }
 0x639   :  { %1853 = vmatpush.msra.mxu1 %v4231_v48 }
 0x63b   :  { %1854 = vmatpush.msra.mxu1 %v4232_v13 }
 0x63d   :  { %1855 = vmatpush.msra.mxu1 %v4233_v0  ;;  %v1901_v0 = vpop.permute.xlu0 %1900 }
 0x63f   :  { %1856 = vmatpush.msra.mxu1 %v4234_v42 }
 0x65d   :  { %v1919_v61 = vpop.permute.xlu1 %1918  ;;  %v1914_v51 = vpop.permute.xlu2 %1913 }
 0x69d   :  { %v1798_v8 = vpop.f32.mrf.mxu1 }
 0x69e   :  { %1820 = vmatmul.f32.vlgmr.msra.gmra.mxu0 %v1798_v8  ;;  %1857 = vmatmul.f32.vlgmr.msra.gmra.mxu1 %v1798_v8 }
 0x6a5   :  { %v1801_v46 = vpop.f32.mrf.mxu1 }
 0x6a6   :  { %1823 = vmatmul.f32.gmra.mxu0 %v1801_v46  ;;  %1860 = vmatmul.f32.gmra.mxu1 %v1801_v46 }
 0x6a7   :  { %1895 = vmatmul.f32.vlgmr.msra.gmra.mxu2 %v1801_v46 }
 0x6ae   :  { %1892 = vmatmul.f32.vlgmr.msrb.gmra.mxu0 %v1798_v8 }
 0x71b   :  { %v1821_v60 = vpop.f32.mrf.mxu0  ;;  %v1858_v18 = vpop.f32.mrf.mxu1 }
 0x71c   :  { %v1837_v48 = vmul.f32 %v1830_v29, %v1821_v60  ;;  %v1872_v13 = vmul.f32 %v1866_v58, %v1858_v18 }
 0x71e   :  { %v1874_v46 = vadd.f32 %v1872_v13, %v1837_v48  ;;  %v1596_v48 = vld [vmem:[%s4123_s13 + $0x60] sm:$0xff]  ;;  %v1597_v13 = vld [vmem:[%s4123_s13 + $0x68] sm:$0xff] }
 0x723   :  { %v1824_v40 = vpop.f32.mrf.mxu0  ;;  %v1861_v9 = vpop.f32.mrf.mxu1 }
 0x724   :  { %v1838_v26 = vmul.f32 %v1835_v34, %v1824_v40  ;;  %v1873_v52 = vmul.f32 %v1870_v62, %v1861_v9  ;;  %v1593_v9 = vld [vmem:[%s4123_s13 + $0x48] sm:$0xff] }
 0x726   :  { %v1875_v31 = vadd.f32 %v1873_v52, %v1838_v26  ;;  %v1594_v26 = vld [vmem:[%s4123_s13 + $0x50] sm:$0xff]  ;;  %v1595_v52 = vld [vmem:[%s4123_s13 + $0x58] sm:$0xff] }
 0x72a   :  { %v1896_v42 = vpop.f32.mrf.mxu2 }
 0x72b   :  { %v1908_v5 = vmul.f32 %v1905_v45, %v1896_v42  ;;  %v1893_v36 = vpop.f32.mrf.mxu0 }
 0x72c   :  { %v1907_v8 = vmul.f32 %v1901_v0, %v1893_v36  ;;  %v1598_v0 = vld [vmem:[%s4123_s13 + $0x70] sm:$0xff] }
 0x72d   :  { %v1910_v15 = vadd.f32 %v1908_v5, %v1875_v31 }
 0x72e   :  { %v1909_v59 = vadd.f32 %v1907_v8, %v1874_v46 }
 0x72f   :  { %v1922_v32 = vadd.f32 %v1919_v61, %v1910_v15  ;;  %v1584_v61 = vld [vmem:[%s4123_s13] sm:$0xff]  ;;  %v1585_v15 = vld [vmem:[%s4123_s13 + $0x8] sm:$0xff] }
 0x730   :  { %v1921_v19 = vadd.f32 %v1914_v51, %v1909_v59  ;;  %v1586_v51 = vld [vmem:[%s4123_s13 + $0x10] sm:$0xff]  ;;  %v1587_v59 = vld [vmem:[%s4123_s13 + $0x18] sm:$0xff] }
 0x731   :  { %v1924_v6 = vsub.f32 0.0, %v1922_v32 }
 0x732   :  { %v1923_v38 = vsub.f32 0.0, %v1921_v19 }
 0x733   :  { %v1927_v49 = vmul.f32 1.442695, %v1924_v6  ;;  %v1590_v6 = vld [vmem:[%s4123_s13 + $0x30] sm:$0xff] }
 0x734   :  { %v1925_v34 = vmul.f32 1.442695, %v1923_v38  ;;  %v1591_v38 = vld [vmem:[%s4123_s13 + $0x38] sm:$0xff] }
 0x735   :  { %2253 = vpow2.f32 %v1927_v49  ;;  %v1592_v49 = vld [vmem:[%s4123_s13 + $0x40] sm:$0xff] }
 0x736   :  { %2255 = vpow2.f32 %v1925_v34 }
 0x73b   :  { %v2254_v62 = vpop.eup %2253 }
 0x73c   :  { %v2256_v60 = vpop.eup %2255  ;;  %v1930_v18 = vadd.f32 1.0, %v2254_v62 }
 0x73d   :  { %v1929_v29 = vadd.f32 1.0, %v2256_v60 }
 0x73e   :  { %2257 = vrcp.f32 %v1930_v18 }
 0x73f   :  { %2259 = vrcp.f32 %v1929_v29 }
 0x744   :  { %v2258_v40 = vpop.eup %2257 }
 0x745   :  { %v2260_v36 = vpop.eup %2259  ;;  %v1934_v45 = vmul.f32 %v2258_v40, %v1922_v32  ;;  %v1588_v32 = vld [vmem:[%s4123_s13 + $0x20] sm:$0xff] }
 0x746   :  { %v1933_v58 = vmul.f32 %v2260_v36, %v1921_v19  ;;  %v1589_v19 = vld [vmem:[%s4123_s13 + $0x28] sm:$0xff] }
 0x747   :  { %2189 = vmatpush.msk.msrb.mxu1 %vm1454_vm3, %v1934_v45 }
 0x749   :  { %1998 = vmatpush.msrb.mxu1 %v1933_v58 }
 0x74a   :  { %2190 = vmatmul.msk.f32.vlgmr.msrb.gmra.mxu1 %vm1408_vm4, %v1584_v61 }
 0x752   :  { %2191 = vmatmul.msk.f32.gmra.mxu1 %vm1408_vm4, %v1585_v15  ;;  %v4237_v15 = vmax.f32 %v3746_v63, 0.0 }
 0x75a   :  { %2192 = vmatmul.msk.f32.gmra.mxu1 %vm1408_vm4, %v1586_v51 }
 0x762   :  { %2193 = vmatmul.msk.f32.gmra.mxu1 %vm1408_vm4, %v1587_v59 }
 0x76a   :  { %2194 = vmatmul.msk.f32.gmra.mxu1 %vm1408_vm4, %v1588_v32  ;;  %v4238_v32 = vmax.f32 %v3740_v54, 0.0 }
 0x772   :  { %2195 = vmatmul.msk.f32.gmra.mxu1 %vm1408_vm4, %v1589_v19 }
 0x77a   :  { %2196 = vmatmul.msk.f32.gmra.mxu1 %vm1408_vm4, %v1590_v6 }
 0x782   :  { %2197 = vmatmul.msk.f32.gmra.mxu1 %vm1408_vm4, %v1591_v38  ;;  %v4239_v38 = vmax.f32 %v3731_v23, 0.0 }
 0x78a   :  { %2198 = vmatmul.msk.f32.gmra.mxu1 %vm1408_vm4, %v1592_v49 }
 0x792   :  { %2199 = vmatmul.msk.f32.gmra.mxu1 %vm1408_vm4, %v1593_v9 }
 0x79a   :  { %2200 = vmatmul.msk.f32.gmra.mxu1 %vm1408_vm4, %v1594_v26  ;;  %v4240_v26 = vmax.f32 %v3725_v16, 0.0 }
 0x7a2   :  { %2201 = vmatmul.msk.f32.gmra.mxu1 %vm1408_vm4, %v1595_v52 }
 0x7aa   :  { %2202 = vmatmul.msk.f32.gmra.mxu1 %vm1408_vm4, %v1596_v48 }
 0x7b2   :  { %2203 = vmatmul.msk.f32.gmra.mxu1 %vm1408_vm4, %v1597_v13  ;;  %v4241_v13 = vmax.f32 %v3719_v53, 0.0 }
 0x7ba   :  { %2204 = vmatmul.msk.f32.gmra.mxu1 %vm1408_vm4, %v1598_v0 }
 0x7c7   :  { %v2000_v42 = vpop.f32.mrf.mxu1 }
 0x7c8   :  { %v2045_v31 = vadd.f32 %v2000_v42, %v3927_v28 }
 0x7ca   :  { %v2060_v5 = vadd.f32 %v2045_v31, %v1535_v47  ;;  %v4242_v31 = vmax.f32 %v3715_v22, 0.0 }
 0x7cc   :  { %v2075_v46 = vmax.f32 %v2060_v5, 0.0 }
 0x7ce   :  { %2090 = vst [vmem:[%s4124_s16] sm:$0xff] %v2075_v46 }
 0x7cf   :  { %v2003_v8 = vpop.f32.mrf.mxu1 }
 0x7d0   :  { %v2046_v34 = vadd.f32 %v2003_v8, %v3924_v12  ;;  %v4243_v8 = vmax.f32 %v3706_v17, 0.0 }
 0x7d2   :  { %v2061_v62 = vadd.f32 %v2046_v34, %v1536_v37 }
 0x7d4   :  { %v2076_v60 = vmax.f32 %v2061_v62, 0.0 }
 0x7d6   :  { %2091 = vst [vmem:[%s4124_s16 + $0x8] sm:$0xff] %v2076_v60  ;;  %v4244_v60 = vmax.f32 %v3709_v21, 0.0 }
 0x7d7   :  { %v2006_v28 = vpop.f32.mrf.mxu1 }
 0x7d8   :  { %v2047_v20 = vadd.f32 %v2006_v28, %v3921_v14 }
 0x7da   :  { %v2062_v47 = vadd.f32 %v2047_v20, %v1537_v56 }
 0x7dc   :  { %v2077_v18 = vmax.f32 %v2062_v47, 0.0 }
 0x7de   :  { %2092 = vst [vmem:[%s4124_s16 + $0x10] sm:$0xff] %v2077_v18 }
 0x7df   :  { %v2009_v12 = vpop.f32.mrf.mxu1 }
 0x7e0   :  { %v2048_v39 = vadd.f32 %v2009_v12, %v3918_v35 }
 0x7e2   :  { %v2063_v37 = vadd.f32 %v2048_v39, %v1538_v24  ;;  %v4235_v24 = vmax.f32 %v3758_v25, 0.0 }
 0x7e4   :  { %v2078_v29 = vmax.f32 %v2063_v37, 0.0 }
 0x7e6   :  { %2093 = vst [vmem:[%s4124_s16 + $0x18] sm:$0xff] %v2078_v29 }
 0x7e7   :  { %v2012_v14 = vpop.f32.mrf.mxu1 }
 0x7e8   :  { %v2049_v27 = vadd.f32 %v2012_v14, %v3915_v4 }
 0x7ea   :  { %v2064_v56 = vadd.f32 %v2049_v27, %v1539_v1  ;;  %v4236_v1 = vmax.f32 %v3752_v55, 0.0 }
 0x7ec   :  { %v2079_v40 = vmax.f32 %v2064_v56, 0.0 }
 0x7ee   :  { %2094 = vst [vmem:[%s4124_s16 + $0x20] sm:$0xff] %v2079_v40 }
 0x7ef   :  { %v2015_v35 = vpop.f32.mrf.mxu1 }
 0x7f0   :  { %v2050_v3 = vadd.f32 %v2015_v35, %v3912_v2 }
 0x7f2   :  { %v2065_v36 = vadd.f32 %v2050_v3, %v4235_v24 }
 0x7f4   :  { %v2080_v45 = vmax.f32 %v2065_v36, 0.0 }
 0x7f6   :  { %2095 = vst [vmem:[%s4124_s16 + $0x28] sm:$0xff] %v2080_v45 }
 0x7f7   :  { %v2018_v4 = vpop.f32.mrf.mxu1 }
 0x7f8   :  { %v2051_v50 = vadd.f32 %v2018_v4, %v3909_v57 }
 0x7fa   :  { %v2066_v58 = vadd.f32 %v2051_v50, %v4236_v1 }
 0x7fc   :  { %v2081_v61 = vmax.f32 %v2066_v58, 0.0 }
 0x7fe   :  { %2096 = vst [vmem:[%s4124_s16 + $0x30] sm:$0xff] %v2081_v61 }
 0x7ff   :  { %v2021_v2 = vpop.f32.mrf.mxu1 }
 0x800   :  { %v2052_v25 = vadd.f32 %v2021_v2, %v3906_v43 }
 0x802   :  { %v2067_v51 = vadd.f32 %v2052_v25, %v4237_v15 }
 0x804   :  { %v2082_v59 = vmax.f32 %v2067_v51, 0.0 }
 0x806   :  { %2097 = vst [vmem:[%s4124_s16 + $0x38] sm:$0xff] %v2082_v59 }
 0x807   :  { %v2024_v57 = vpop.f32.mrf.mxu1 }
 0x808   :  { %v2053_v55 = vadd.f32 %v2024_v57, %v3903_v30 }
 0x80a   :  { %v2068_v19 = vadd.f32 %v2053_v55, %v4238_v32 }
 0x80c   :  { %v2083_v6 = vmax.f32 %v2068_v19, 0.0 }
 0x80e   :  { %2098 = vst [vmem:[%s4124_s16 + $0x40] sm:$0xff] %v2083_v6 }
 0x80f   :  { %v2027_v43 = vpop.f32.mrf.mxu1 }
 0x810   :  { %v2054_v63 = vadd.f32 %v2027_v43, %v3900_v7 }
 0x812   :  { %v2069_v49 = vadd.f32 %v2054_v63, %v4239_v38 }
 0x814   :  { %v2084_v9 = vmax.f32 %v2069_v49, 0.0 }
 0x816   :  { %2099 = vst [vmem:[%s4124_s16 + $0x48] sm:$0xff] %v2084_v9 }
 0x817   :  { %v2030_v30 = vpop.f32.mrf.mxu1 }
 0x818   :  { %v2055_v54 = vadd.f32 %v2030_v30, %v3897_v33 }
 0x81a   :  { %v2070_v52 = vadd.f32 %v2055_v54, %v4240_v26 }
 0x81c   :  { %v2085_v48 = vmax.f32 %v2070_v52, 0.0 }
 0x81e   :  { %2100 = vst [vmem:[%s4124_s16 + $0x50] sm:$0xff] %v2085_v48 }
 0x81f   :  { %v2033_v7 = vpop.f32.mrf.mxu1 }
 0x820   :  { %v2056_v23 = vadd.f32 %v2033_v7, %v3894_v10 }
 0x822   :  { %v2071_v0 = vadd.f32 %v2056_v23, %v4241_v13 }
 0x824   :  { %v2086_v42 = vmax.f32 %v2071_v0, 0.0 }
 0x826   :  { %2101 = vst [vmem:[%s4124_s16 + $0x58] sm:$0xff] %v2086_v42 }
 0x827   :  { %v2036_v33 = vpop.f32.mrf.mxu1 }
 0x828   :  { %v2057_v16 = vadd.f32 %v2036_v33, %v3891_v44 }
 0x82a   :  { %v2072_v5 = vadd.f32 %v2057_v16, %v4242_v31 }
 0x82c   :  { %v2087_v46 = vmax.f32 %v2072_v5, 0.0 }
 0x82e   :  { %2102 = vst [vmem:[%s4124_s16 + $0x60] sm:$0xff] %v2087_v46 }
 0x82f   :  { %v2039_v10 = vpop.f32.mrf.mxu1 }
 0x830   :  { %v2058_v53 = vadd.f32 %v2039_v10, %v3888_v41 }
 0x832   :  { %v2073_v34 = vadd.f32 %v2058_v53, %v4243_v8 }
 0x834   :  { %v2088_v62 = vmax.f32 %v2073_v34, 0.0 }
 0x836   :  { %2103 = vst [vmem:[%s4124_s16 + $0x68] sm:$0xff] %v2088_v62 }
 0x837   :  { %v2042_v44 = vpop.f32.mrf.mxu1 }
 0x838   :  { %v2059_v22 = vadd.f32 %v2042_v44, %v3886_v11 }
 0x83a   :  { %v2074_v28 = vadd.f32 %v2059_v22, %v4244_v60 }
 0x83c   :  { %v2089_v20 = vmax.f32 %v2074_v28, 0.0 }
 0x83e   :  { %2104 = vst [vmem:[%s4124_s16 + $0x70] sm:$0xff] %v2089_v20 }

</bundles_post_ra>
